<compile_context>
chip_gen: v6e
topology: v6e:2x2x1
jax: 0.10.0
libtpu: 0.0.40
codegen_flags: <defaults>
</compile_context>

<pallas_src>
import jax
import jax.numpy as jnp
from jax import lax
from jax.experimental import pallas as pl
from jax.experimental.pallas import tpu as pltpu

_VPU_CONV_MAX_K = 16   # 1x1 convs with contraction depth <= 16 run on the VPU
_PAD_PENALTY = 1e9     # added to dist for padded columns -> exp(-dist) == 0


def _pointwise_conv(w, x):
    """Conv1d(cin, cout, kernel_size=1): (cout, cin) @ (cin, L) -> (cout, L)."""
    cout, cin = w.shape
    if cin > _VPU_CONV_MAX_K:
        return jnp.dot(w, x, preferred_element_type=jnp.float32)
    # Tiny contraction depth: unrolled VPU broadcast-FMA, tree-reduced so the
    # dependent-add chain is log2(cin) deep and the 4 VALU slots stay busy.
    terms = [w[:, k:k + 1] * x[k:k + 1, :] for k in range(cin)]
    while len(terms) > 1:
        nxt = [terms[i] + terms[i + 1] for i in range(0, len(terms) - 1, 2)]
        if len(terms) % 2:
            nxt.append(terms[-1])
        terms = nxt
    return terms[0]


def _row_sums_row_layout(m):
    """Row sums of an (L, L) matrix presented as a (1, L) row vector.

    Needed only when the matrix may be asymmetric; one thin f32 NT matmul."""
    l = m.shape[0]
    ones8 = jnp.ones((8, l), jnp.float32)
    return lax.dot_general(ones8, m, (((1,), (1,)), ((), ())),
                           preferred_element_type=jnp.float32)[0:1, :]


def _jgcn_conv(x, old_a, old_a_rs_row, r, w, b, pad_pen_row):
    """One JGCNConv layer on (cin, L) features.

    old_a_rs_row: (1, L) row sums of old_a in ROW layout (old_a may be asymmetric).
    pad_pen_row:  (1, L) 0 for valid columns, +1e9 for padded columns.
    Returns (out (cout, L), A (L, L))."""
    cin, l = x.shape
    rx = _pointwise_conv(r, x)                                        # (16, L)

    # --- pairwise distances + padding penalty in ONE augmented MXU matmul ----
    # dist[i,j] = -2<rx_i,rx_j> + t[i] + t[j],  t = |rx_.|^2 + pad_penalty
    sq_row = jnp.sum(rx * rx, axis=0, keepdims=True)                  # (1, L) sublane reduce
    t = sq_row + pad_pen_row                                          # (1, L)
    sub = lax.broadcasted_iota(jnp.int32, (8, l), 0)
    row0 = (sub == 0).astype(jnp.float32)
    row1 = (sub == 1).astype(jnp.float32)
    extra_p = row0 + row1 * t                                         # rows: [1 ; t ; 0...]
    extra_q = row0 * t + row1                                         # rows: [t ; 1 ; 0...]
    p_mat = jnp.concatenate([-2.0 * rx, extra_p], axis=0)             # (24, L)
    q_mat = jnp.concatenate([rx, extra_q], axis=0)                    # (24, L)
    dist = lax.dot_general(p_mat, q_mat, (((0,), (0,)), ((), ())),
                           preferred_element_type=jnp.float32)        # (L, L)
    a = jnp.exp(-dist)            # symmetric; padded rows/cols are exactly 0

    # --- normalize #1 (input symmetric -> both degree layouts are cheap reduces)
    dc1 = lax.rsqrt(jnp.maximum(jnp.sum(a, axis=1, keepdims=True), 1.0))   # (L,1)
    dr1 = lax.rsqrt(jnp.maximum(jnp.sum(a, axis=0, keepdims=True), 1.0))   # (1,L)
    s = dc1 * a * dr1                                                  # still symmetric

    # --- normalize #2 (s + old_a may be asymmetric) --------------------------
    m = s + old_a
    deg_col = jnp.sum(m, axis=1, keepdims=True)                        # exact row sums
    # row sums in ROW layout: symmetric part via sublane reduce + old_a's row sums
    deg_row = jnp.sum(s, axis=0, keepdims=True) + old_a_rs_row
    dc2 = lax.rsqrt(jnp.maximum(deg_col, 1.0))
    dr2 = lax.rsqrt(jnp.maximum(deg_row, 1.0))
    a_out = dc2 * m * dr2

    # --- feature update: contract A against the thinner of {x, W@x} ----------
    cout = w.shape[0]
    if cout < cin:                                   # layer 2: (W @ x) @ A^T + b
        h = _pointwise_conv(w, x)                                      # (cout, L)
        out = lax.dot_general(h, a_out, (((1,), (1,)), ((), ())),
                              preferred_element_type=jnp.float32) + b
    else:                                            # layer 1: W @ (x @ A^T) + b
        xa = lax.dot_general(x, a_out, (((1,), (1,)), ((), ())),
                             preferred_element_type=jnp.float32)       # (cin, L)
        out = _pointwise_conv(w, xa) + b
    return out, a_out


def _jgcn_kernel(x_ref, a0_ref, a0rs_ref, pad_ref, r1_ref, w1_ref, b1_ref,
                 r2_ref, w2_ref, b2_ref, xout_ref, a1_ref, a2_ref):
    x = x_ref[...]                                                     # (fin_p, L_p)
    a0 = a0_ref[...]                                                   # (L_p, L_p)
    pad_pen = pad_ref[...]                                             # (1, L_p)
    # TODO(synk): nn.Dropout (dp1/dp2) is identity at inference and is omitted.
    h1, a1 = _jgcn_conv(x, a0, a0rs_ref[...], r1_ref[...], w1_ref[...],
                        b1_ref[...], pad_pen)
    h1 = jnp.where(h1 > 0, h1, 0.2 * h1)                               # leaky_relu(0.2)
    a1_rs = _row_sums_row_layout(a1)    # A1 may be asymmetric -> one thin matmul
    h2, a2 = _jgcn_conv(h1, a1, a1_rs, r2_ref[...], w2_ref[...], b2_ref[...],
                        pad_pen)
    xout_ref[...] = h2.astype(xout_ref.dtype)
    a1_ref[...] = a1.astype(a1_ref.dtype)
    a2_ref[...] = a2.astype(a2_ref.dtype)


def _round_up(v, m):
    return ((v + m - 1) // m) * m


@jax.jit
def jgcn_forward(x_nodes, a0, r1, w1, b1, r2, w2, b2):
    """JGCN forward. x_nodes: (L, fin); a0: (L, L) base adjacency.

    Returns (x (1, num_classes, L), [A1 (1, L, L), A2 (1, L, L)])."""
    l, fin = x_nodes.shape
    hid = r1.shape[0]                    # 16 (hard-coded in JGCNConv.R)
    nc = w2.shape[0]
    fin_p = _round_up(fin, 8)            # sublane-align the fin contraction
    l_p = _round_up(l, 128)              # lane-dense L for every vector op/store

    # Layout plumbing, zero-padding and the a0 row-sum / pad-penalty auxiliaries
    # are wrapper-side XLA work (exact: padded rows/cols are zero).
    x_cl = jnp.pad(x_nodes.T.astype(jnp.float32),
                   ((0, fin_p - fin), (0, l_p - l)))
    a0f = jnp.pad(a0.astype(jnp.float32), ((0, l_p - l), (0, l_p - l)))
    a0_rs = jnp.sum(a0f, axis=1)[None, :]                              # (1, L_p)
    pad_pen = jnp.where(jnp.arange(l_p) < l, 0.0,
                        _PAD_PENALTY).astype(jnp.float32)[None, :]     # (1, L_p)
    r1p = jnp.pad(r1.astype(jnp.float32), ((0, 0), (0, fin_p - fin)))
    w1p = jnp.pad(w1.astype(jnp.float32), ((0, 0), (0, fin_p - fin)))
    b1c = b1.reshape(-1, 1).astype(jnp.float32)
    r2f = r2.astype(jnp.float32)
    w2f = w2.astype(jnp.float32)
    b2c = b2.reshape(-1, 1).astype(jnp.float32)

    # Advisory cost of the fused two-layer forward (dominant terms: L x L MXU work).
    flops = 2 * l_p * l_p * (2 * (hid + 8) + fin_p + nc + 8) + 14 * l_p * l_p
    transcendentals = 2 * l_p * l_p + 8 * l_p
    bytes_accessed = 4 * (3 * l_p * l_p + (fin_p + nc + 3) * l_p
                          + 2 * hid * fin_p + hid * hid + nc * hid + hid + nc)
    # Scoped VMEM sized to actual residency (default 16/32 MiB caps L well below
    # physical VMEM); leave headroom below the 64 MiB v7x / 128 MiB v5e-v6e cap.
    vmem_bytes = int(min(100 << 20,
                         max(32 << 20, 4 * (20 * l_p * l_p + 64 * l_p))))

    x_out, a1, a2 = pl.pallas_call(
        _jgcn_kernel,
        out_shape=(
            jax.ShapeDtypeStruct((nc, l_p), jnp.float32),
            jax.ShapeDtypeStruct((l_p, l_p), jnp.float32),
            jax.ShapeDtypeStruct((l_p, l_p), jnp.float32),
        ),
        compiler_params=pltpu.CompilerParams(vmem_limit_bytes=vmem_bytes),
        cost_estimate=pl.CostEstimate(flops=flops,
                                      transcendentals=transcendentals,
                                      bytes_accessed=bytes_accessed),
        # No grid: batch is fixed at 1 and the whole two-layer forward is fused in a
        # single invocation with every operand resident in VMEM.
    )(x_cl, a0f, a0_rs, pad_pen, r1p, w1p, b1c, r2f, w2f, b2c)

    return (x_out[:, :l][None],
            [a1[:l, :l][None], a2[:l, :l][None]])


# ----------------------------- pure-JAX reference -----------------------------

def _normalize_graph_ref(a):
    deg = jnp.maximum(jnp.sum(a, axis=-1), 1.0) ** -0.5
    return deg[:, None] * a * deg[None, :]


def _jgcn_conv_ref(x, old_a, r, w, b):
    hp = jax.lax.Precision.HIGHEST
    rx = jnp.dot(r, x, precision=hp)
    sq = jnp.sum(rx * rx, axis=0)
    dist = sq[:, None] + sq[None, :] - 2.0 * jnp.dot(rx.T, rx, precision=hp)
    a = jnp.exp(-dist)
    a = _normalize_graph_ref(a)
    a = _normalize_graph_ref(a + old_a)
    xa = jnp.dot(x, a.T, precision=hp)
    return jnp.dot(w, xa, precision=hp) + b[:, None], a


def _jgcn_ref(x_nodes, a0, r1, w1, b1, r2, w2, b2):
    x = x_nodes.T
    h1, a1 = _jgcn_conv_ref(x, a0, r1, w1, b1)
    h1 = jnp.where(h1 > 0, h1, 0.2 * h1)
    h2, a2 = _jgcn_conv_ref(h1, a1, r2, w2, b2)
    return h2, a1, a2


if __name__ == "__main__":
    # Small shapes consistent with the module: L=16 nodes, fin=4 input features,
    # hidden=16 (fixed by JGCNConv's R), num_classes=8.
    L, FIN, HID, NC = 16, 4, 16, 8
    key = jax.random.PRNGKey(0)
    kx, ka, k1, k2, k3, k4 = jax.random.split(key, 6)

    x_nodes = jax.random.normal(kx, (L, FIN), dtype=jnp.float32)
    # Base adjacency handed to JGCN's constructor (asymmetric on purpose to exercise
    # the general row/column degree-scaling path of the second normalize).
    a0 = jax.random.uniform(ka, (L, L), dtype=jnp.float32)

    def conv1d_init(kk, cout, cin, with_bias):
        bound = 1.0 / (cin ** 0.5)
        kw, kb = jax.random.split(kk)
        w = jax.random.uniform(kw, (cout, cin), minval=-bound, maxval=bound,
                               dtype=jnp.float32)
        b = jax.random.uniform(kb, (cout,), minval=-bound, maxval=bound,
                               dtype=jnp.float32) if with_bias else None
        return w, b

    r1, _ = conv1d_init(k1, HID, FIN, False)    # conv1.R (bias=False)
    w1, b1 = conv1d_init(k2, HID, FIN, True)    # conv1.W
    r2, _ = conv1d_init(k3, HID, HID, False)    # conv2.R (bias=False)
    w2, b2 = conv1d_init(k4, NC, HID, True)     # conv2.W

    x_out, adj = jgcn_forward(x_nodes, a0, r1, w1, b1, r2, w2, b2)
    a1, a2 = adj
    jax.block_until_ready((x_out, a1, a2))

    # Reference check in plain JAX (same math as the PyTorch module).
    x_ref, a1_ref, a2_ref = _jgcn_ref(x_nodes, a0, r1, w1, b1, r2, w2, b2)

    assert x_out.shape == (1, NC, L)
    assert a1.shape == (1, L, L) and a2.shape == (1, L, L)
    assert jnp.allclose(a1[0], a1_ref, atol=1e-3, rtol=1e-3), \
        float(jnp.max(jnp.abs(a1[0] - a1_ref)))
    assert jnp.allclose(a2[0], a2_ref, atol=1e-3, rtol=1e-3), \
        float(jnp.max(jnp.abs(a2[0] - a2_ref)))
    assert jnp.allclose(x_out[0], x_ref, atol=1e-3, rtol=1e-3), \
        float(jnp.max(jnp.abs(x_out[0] - x_ref)))

    print("KERNEL_OK")
</pallas_src>

<mosaic_0001>
module attributes {stable_mosaic.version = 11 : i64} {
  func.func @_jgcn_kernel(%arg0: memref<8x128xf32, #tpu.memory_space<vmem>>, %arg1: memref<128x128xf32, #tpu.memory_space<vmem>>, %arg2: memref<1x128xf32, #tpu.memory_space<vmem>>, %arg3: memref<1x128xf32, #tpu.memory_space<vmem>>, %arg4: memref<16x8xf32, #tpu.memory_space<vmem>>, %arg5: memref<16x8xf32, #tpu.memory_space<vmem>>, %arg6: memref<16x1xf32, #tpu.memory_space<vmem>>, %arg7: memref<16x16xf32, #tpu.memory_space<vmem>>, %arg8: memref<8x16xf32, #tpu.memory_space<vmem>>, %arg9: memref<8x1xf32, #tpu.memory_space<vmem>>, %arg10: memref<8x128xf32, #tpu.memory_space<vmem>>, %arg11: memref<128x128xf32, #tpu.memory_space<vmem>>, %arg12: memref<128x128xf32, #tpu.memory_space<vmem>>) attributes {dimension_semantics = [], scalar_prefetch = 0 : i64, scratch_operands = 0 : i64, tpu.core_type = #tpu.core_type<tc>} {
    %c0 = arith.constant 0 : index
    %c0_0 = arith.constant 0 : index
    %0 = vector.load %arg0[%c0, %c0_0] : memref<8x128xf32, #tpu.memory_space<vmem>>, vector<8x128xf32>
    %c0_1 = arith.constant 0 : index
    %c0_2 = arith.constant 0 : index
    %1 = vector.load %arg1[%c0_1, %c0_2] : memref<128x128xf32, #tpu.memory_space<vmem>>, vector<128x128xf32>
    %c0_3 = arith.constant 0 : index
    %c0_4 = arith.constant 0 : index
    %2 = vector.load %arg3[%c0_3, %c0_4] : memref<1x128xf32, #tpu.memory_space<vmem>>, vector<1x128xf32>
    %c0_5 = arith.constant 0 : index
    %c0_6 = arith.constant 0 : index
    %3 = vector.load %arg2[%c0_5, %c0_6] : memref<1x128xf32, #tpu.memory_space<vmem>>, vector<1x128xf32>
    %c0_7 = arith.constant 0 : index
    %c0_8 = arith.constant 0 : index
    %4 = vector.load %arg4[%c0_7, %c0_8] : memref<16x8xf32, #tpu.memory_space<vmem>>, vector<16x8xf32>
    %c0_9 = arith.constant 0 : index
    %c0_10 = arith.constant 0 : index
    %5 = vector.load %arg5[%c0_9, %c0_10] : memref<16x8xf32, #tpu.memory_space<vmem>>, vector<16x8xf32>
    %c0_11 = arith.constant 0 : index
    %c0_12 = arith.constant 0 : index
    %6 = vector.load %arg6[%c0_11, %c0_12] : memref<16x1xf32, #tpu.memory_space<vmem>>, vector<16x1xf32>
    %7 = vector.extract_strided_slice %4 {offsets = [0, 0], sizes = [16, 1], strides = [1, 1]} : vector<16x8xf32> to vector<16x1xf32>
    %8 = vector.extract_strided_slice %0 {offsets = [0, 0], sizes = [1, 128], strides = [1, 1]} : vector<8x128xf32> to vector<1x128xf32>
    %9 = vector.broadcast %7 : vector<16x1xf32> to vector<16x128xf32>
    %10 = vector.broadcast %8 : vector<1x128xf32> to vector<16x128xf32>
    %11 = arith.mulf %9, %10 : vector<16x128xf32>
    %12 = vector.extract_strided_slice %4 {offsets = [0, 1], sizes = [16, 1], strides = [1, 1]} : vector<16x8xf32> to vector<16x1xf32>
    %13 = vector.extract_strided_slice %0 {offsets = [1, 0], sizes = [1, 128], strides = [1, 1]} : vector<8x128xf32> to vector<1x128xf32>
    %14 = vector.broadcast %12 : vector<16x1xf32> to vector<16x128xf32>
    %15 = vector.broadcast %13 : vector<1x128xf32> to vector<16x128xf32>
    %16 = arith.mulf %14, %15 : vector<16x128xf32>
    %17 = vector.extract_strided_slice %4 {offsets = [0, 2], sizes = [16, 1], strides = [1, 1]} : vector<16x8xf32> to vector<16x1xf32>
    %18 = vector.extract_strided_slice %0 {offsets = [2, 0], sizes = [1, 128], strides = [1, 1]} : vector<8x128xf32> to vector<1x128xf32>
    %19 = vector.broadcast %17 : vector<16x1xf32> to vector<16x128xf32>
    %20 = vector.broadcast %18 : vector<1x128xf32> to vector<16x128xf32>
    %21 = arith.mulf %19, %20 : vector<16x128xf32>
    %22 = vector.extract_strided_slice %4 {offsets = [0, 3], sizes = [16, 1], strides = [1, 1]} : vector<16x8xf32> to vector<16x1xf32>
    %23 = vector.extract_strided_slice %0 {offsets = [3, 0], sizes = [1, 128], strides = [1, 1]} : vector<8x128xf32> to vector<1x128xf32>
    %24 = vector.broadcast %22 : vector<16x1xf32> to vector<16x128xf32>
    %25 = vector.broadcast %23 : vector<1x128xf32> to vector<16x128xf32>
    %26 = arith.mulf %24, %25 : vector<16x128xf32>
    %27 = vector.extract_strided_slice %4 {offsets = [0, 4], sizes = [16, 1], strides = [1, 1]} : vector<16x8xf32> to vector<16x1xf32>
    %28 = vector.extract_strided_slice %0 {offsets = [4, 0], sizes = [1, 128], strides = [1, 1]} : vector<8x128xf32> to vector<1x128xf32>
    %29 = vector.broadcast %27 : vector<16x1xf32> to vector<16x128xf32>
    %30 = vector.broadcast %28 : vector<1x128xf32> to vector<16x128xf32>
    %31 = arith.mulf %29, %30 : vector<16x128xf32>
    %32 = vector.extract_strided_slice %4 {offsets = [0, 5], sizes = [16, 1], strides = [1, 1]} : vector<16x8xf32> to vector<16x1xf32>
    %33 = vector.extract_strided_slice %0 {offsets = [5, 0], sizes = [1, 128], strides = [1, 1]} : vector<8x128xf32> to vector<1x128xf32>
    %34 = vector.broadcast %32 : vector<16x1xf32> to vector<16x128xf32>
    %35 = vector.broadcast %33 : vector<1x128xf32> to vector<16x128xf32>
    %36 = arith.mulf %34, %35 : vector<16x128xf32>
    %37 = vector.extract_strided_slice %4 {offsets = [0, 6], sizes = [16, 1], strides = [1, 1]} : vector<16x8xf32> to vector<16x1xf32>
    %38 = vector.extract_strided_slice %0 {offsets = [6, 0], sizes = [1, 128], strides = [1, 1]} : vector<8x128xf32> to vector<1x128xf32>
    %39 = vector.broadcast %37 : vector<16x1xf32> to vector<16x128xf32>
    %40 = vector.broadcast %38 : vector<1x128xf32> to vector<16x128xf32>
    %41 = arith.mulf %39, %40 : vector<16x128xf32>
    %42 = vector.extract_strided_slice %4 {offsets = [0, 7], sizes = [16, 1], strides = [1, 1]} : vector<16x8xf32> to vector<16x1xf32>
    %43 = vector.extract_strided_slice %0 {offsets = [7, 0], sizes = [1, 128], strides = [1, 1]} : vector<8x128xf32> to vector<1x128xf32>
    %44 = vector.broadcast %42 : vector<16x1xf32> to vector<16x128xf32>
    %45 = vector.broadcast %43 : vector<1x128xf32> to vector<16x128xf32>
    %46 = arith.mulf %44, %45 : vector<16x128xf32>
    %47 = arith.addf %11, %16 : vector<16x128xf32>
    %48 = arith.addf %21, %26 : vector<16x128xf32>
    %49 = arith.addf %31, %36 : vector<16x128xf32>
    %50 = arith.addf %41, %46 : vector<16x128xf32>
    %51 = arith.addf %47, %48 : vector<16x128xf32>
    %52 = arith.addf %49, %50 : vector<16x128xf32>
    %53 = arith.addf %51, %52 : vector<16x128xf32>
    %54 = arith.mulf %53, %53 : vector<16x128xf32>
    %cst = arith.constant dense<0.000000e+00> : vector<128xf32>
    %55 = vector.multi_reduction <add>, %54, %cst [0] : vector<16x128xf32> to vector<128xf32>
    %56 = vector.shape_cast %55 : vector<128xf32> to vector<1x128xf32>
    %57 = arith.addf %56, %2 : vector<1x128xf32>
    %58 = tpu.iota {dimensions = array<i32: 0>} : vector<8x128xi32>
    %c0_i32 = arith.constant 0 : i32
    %59 = vector.broadcast %c0_i32 : i32 to vector<8x128xi32>
    %60 = arith.cmpi eq, %58, %59 : vector<8x128xi32>
    %61 = arith.extui %60 : vector<8x128xi1> to vector<8x128xi32>
    %62 = arith.sitofp %61 : vector<8x128xi32> to vector<8x128xf32>
    %c1_i32 = arith.constant 1 : i32
    %63 = vector.broadcast %c1_i32 : i32 to vector<8x128xi32>
    %64 = arith.cmpi eq, %58, %63 : vector<8x128xi32>
    %65 = arith.extui %64 : vector<8x128xi1> to vector<8x128xi32>
    %66 = arith.sitofp %65 : vector<8x128xi32> to vector<8x128xf32>
    %67 = vector.broadcast %57 : vector<1x128xf32> to vector<8x128xf32>
    %68 = arith.mulf %66, %67 : vector<8x128xf32>
    %69 = arith.addf %62, %68 : vector<8x128xf32>
    %70 = vector.broadcast %57 : vector<1x128xf32> to vector<8x128xf32>
    %71 = arith.mulf %62, %70 : vector<8x128xf32>
    %72 = arith.addf %71, %66 : vector<8x128xf32>
    %cst_13 = arith.constant -2.000000e+00 : f32
    %73 = vector.broadcast %cst_13 : f32 to vector<16x128xf32>
    %74 = arith.mulf %73, %53 : vector<16x128xf32>
    %75 = tpu.concatenate %74, %69 in 0 : vector<16x128xf32>, vector<8x128xf32> -> vector<24x128xf32>
    %76 = tpu.concatenate %53, %72 in 0 : vector<16x128xf32>, vector<8x128xf32> -> vector<24x128xf32>
    %cst_14 = arith.constant dense<0.000000e+00> : vector<128x128xf32>
    %77 = tpu.matmul %75, %76, %cst_14 {dimension_numbers = #tpu.dot_dimension_numbers<[0], [0], [1], [1], [0, 1, 1, 1], [], []>} : vector<24x128xf32>, vector<24x128xf32>, vector<128x128xf32> -> vector<128x128xf32>
    %cst_15 = arith.constant 0.000000e+00 : f32
    %78 = vector.broadcast %cst_15 : f32 to vector<128x128xf32>
    %79 = arith.subf %78, %77 : vector<128x128xf32>
    %80 = math.exp %79 : vector<128x128xf32>
    %cst_16 = arith.constant dense<0.000000e+00> : vector<128xf32>
    %81 = vector.multi_reduction <add>, %80, %cst_16 [1] : vector<128x128xf32> to vector<128xf32>
    %82 = vector.shape_cast %81 : vector<128xf32> to vector<128x1xf32>
    %cst_17 = arith.constant 1.000000e+00 : f32
    %83 = vector.broadcast %cst_17 : f32 to vector<128x1xf32>
    %84 = arith.maximumf %82, %83 : vector<128x1xf32>
    %85 = math.rsqrt %84 : vector<128x1xf32>
    %cst_18 = arith.constant dense<0.000000e+00> : vector<128xf32>
    %86 = vector.multi_reduction <add>, %80, %cst_18 [0] : vector<128x128xf32> to vector<128xf32>
    %87 = vector.shape_cast %86 : vector<128xf32> to vector<1x128xf32>
    %cst_19 = arith.constant 1.000000e+00 : f32
    %88 = vector.broadcast %cst_19 : f32 to vector<1x128xf32>
    %89 = arith.maximumf %87, %88 : vector<1x128xf32>
    %90 = math.rsqrt %89 : vector<1x128xf32>
    %91 = vector.broadcast %85 : vector<128x1xf32> to vector<128x128xf32>
    %92 = arith.mulf %91, %80 : vector<128x128xf32>
    %93 = vector.broadcast %90 : vector<1x128xf32> to vector<128x128xf32>
    %94 = arith.mulf %92, %93 : vector<128x128xf32>
    %95 = arith.addf %94, %1 : vector<128x128xf32>
    %cst_20 = arith.constant dense<0.000000e+00> : vector<128xf32>
    %96 = vector.multi_reduction <add>, %95, %cst_20 [1] : vector<128x128xf32> to vector<128xf32>
    %97 = vector.shape_cast %96 : vector<128xf32> to vector<128x1xf32>
    %cst_21 = arith.constant dense<0.000000e+00> : vector<128xf32>
    %98 = vector.multi_reduction <add>, %94, %cst_21 [0] : vector<128x128xf32> to vector<128xf32>
    %99 = vector.shape_cast %98 : vector<128xf32> to vector<1x128xf32>
    %100 = arith.addf %99, %3 : vector<1x128xf32>
    %cst_22 = arith.constant 1.000000e+00 : f32
    %101 = vector.broadcast %cst_22 : f32 to vector<128x1xf32>
    %102 = arith.maximumf %97, %101 : vector<128x1xf32>
    %103 = math.rsqrt %102 : vector<128x1xf32>
    %cst_23 = arith.constant 1.000000e+00 : f32
    %104 = vector.broadcast %cst_23 : f32 to vector<1x128xf32>
    %105 = arith.maximumf %100, %104 : vector<1x128xf32>
    %106 = math.rsqrt %105 : vector<1x128xf32>
    %107 = vector.broadcast %103 : vector<128x1xf32> to vector<128x128xf32>
    %108 = arith.mulf %107, %95 : vector<128x128xf32>
    %109 = vector.broadcast %106 : vector<1x128xf32> to vector<128x128xf32>
    %110 = arith.mulf %108, %109 : vector<128x128xf32>
    %cst_24 = arith.constant dense<0.000000e+00> : vector<8x128xf32>
    %111 = tpu.matmul %0, %110, %cst_24 {dimension_numbers = #tpu.dot_dimension_numbers<[1], [1], [0], [0], [0, 0, 1, 0], [], []>} : vector<8x128xf32>, vector<128x128xf32>, vector<8x128xf32> -> vector<8x128xf32>
    %112 = vector.extract_strided_slice %5 {offsets = [0, 0], sizes = [16, 1], strides = [1, 1]} : vector<16x8xf32> to vector<16x1xf32>
    %113 = vector.extract_strided_slice %111 {offsets = [0, 0], sizes = [1, 128], strides = [1, 1]} : vector<8x128xf32> to vector<1x128xf32>
    %114 = vector.broadcast %112 : vector<16x1xf32> to vector<16x128xf32>
    %115 = vector.broadcast %113 : vector<1x128xf32> to vector<16x128xf32>
    %116 = arith.mulf %114, %115 : vector<16x128xf32>
    %117 = vector.extract_strided_slice %5 {offsets = [0, 1], sizes = [16, 1], strides = [1, 1]} : vector<16x8xf32> to vector<16x1xf32>
    %118 = vector.extract_strided_slice %111 {offsets = [1, 0], sizes = [1, 128], strides = [1, 1]} : vector<8x128xf32> to vector<1x128xf32>
    %119 = vector.broadcast %117 : vector<16x1xf32> to vector<16x128xf32>
    %120 = vector.broadcast %118 : vector<1x128xf32> to vector<16x128xf32>
    %121 = arith.mulf %119, %120 : vector<16x128xf32>
    %122 = vector.extract_strided_slice %5 {offsets = [0, 2], sizes = [16, 1], strides = [1, 1]} : vector<16x8xf32> to vector<16x1xf32>
    %123 = vector.extract_strided_slice %111 {offsets = [2, 0], sizes = [1, 128], strides = [1, 1]} : vector<8x128xf32> to vector<1x128xf32>
    %124 = vector.broadcast %122 : vector<16x1xf32> to vector<16x128xf32>
    %125 = vector.broadcast %123 : vector<1x128xf32> to vector<16x128xf32>
    %126 = arith.mulf %124, %125 : vector<16x128xf32>
    %127 = vector.extract_strided_slice %5 {offsets = [0, 3], sizes = [16, 1], strides = [1, 1]} : vector<16x8xf32> to vector<16x1xf32>
    %128 = vector.extract_strided_slice %111 {offsets = [3, 0], sizes = [1, 128], strides = [1, 1]} : vector<8x128xf32> to vector<1x128xf32>
    %129 = vector.broadcast %127 : vector<16x1xf32> to vector<16x128xf32>
    %130 = vector.broadcast %128 : vector<1x128xf32> to vector<16x128xf32>
    %131 = arith.mulf %129, %130 : vector<16x128xf32>
    %132 = vector.extract_strided_slice %5 {offsets = [0, 4], sizes = [16, 1], strides = [1, 1]} : vector<16x8xf32> to vector<16x1xf32>
    %133 = vector.extract_strided_slice %111 {offsets = [4, 0], sizes = [1, 128], strides = [1, 1]} : vector<8x128xf32> to vector<1x128xf32>
    %134 = vector.broadcast %132 : vector<16x1xf32> to vector<16x128xf32>
    %135 = vector.broadcast %133 : vector<1x128xf32> to vector<16x128xf32>
    %136 = arith.mulf %134, %135 : vector<16x128xf32>
    %137 = vector.extract_strided_slice %5 {offsets = [0, 5], sizes = [16, 1], strides = [1, 1]} : vector<16x8xf32> to vector<16x1xf32>
    %138 = vector.extract_strided_slice %111 {offsets = [5, 0], sizes = [1, 128], strides = [1, 1]} : vector<8x128xf32> to vector<1x128xf32>
    %139 = vector.broadcast %137 : vector<16x1xf32> to vector<16x128xf32>
    %140 = vector.broadcast %138 : vector<1x128xf32> to vector<16x128xf32>
    %141 = arith.mulf %139, %140 : vector<16x128xf32>
    %142 = vector.extract_strided_slice %5 {offsets = [0, 6], sizes = [16, 1], strides = [1, 1]} : vector<16x8xf32> to vector<16x1xf32>
    %143 = vector.extract_strided_slice %111 {offsets = [6, 0], sizes = [1, 128], strides = [1, 1]} : vector<8x128xf32> to vector<1x128xf32>
    %144 = vector.broadcast %142 : vector<16x1xf32> to vector<16x128xf32>
    %145 = vector.broadcast %143 : vector<1x128xf32> to vector<16x128xf32>
    %146 = arith.mulf %144, %145 : vector<16x128xf32>
    %147 = vector.extract_strided_slice %5 {offsets = [0, 7], sizes = [16, 1], strides = [1, 1]} : vector<16x8xf32> to vector<16x1xf32>
    %148 = vector.extract_strided_slice %111 {offsets = [7, 0], sizes = [1, 128], strides = [1, 1]} : vector<8x128xf32> to vector<1x128xf32>
    %149 = vector.broadcast %147 : vector<16x1xf32> to vector<16x128xf32>
    %150 = vector.broadcast %148 : vector<1x128xf32> to vector<16x128xf32>
    %151 = arith.mulf %149, %150 : vector<16x128xf32>
    %152 = arith.addf %116, %121 : vector<16x128xf32>
    %153 = arith.addf %126, %131 : vector<16x128xf32>
    %154 = arith.addf %136, %141 : vector<16x128xf32>
    %155 = arith.addf %146, %151 : vector<16x128xf32>
    %156 = arith.addf %152, %153 : vector<16x128xf32>
    %157 = arith.addf %154, %155 : vector<16x128xf32>
    %158 = arith.addf %156, %157 : vector<16x128xf32>
    %159 = vector.broadcast %6 : vector<16x1xf32> to vector<16x128xf32>
    %160 = arith.addf %158, %159 : vector<16x128xf32>
    %cst_25 = arith.constant 0.000000e+00 : f32
    %161 = vector.broadcast %cst_25 : f32 to vector<16x128xf32>
    %162 = arith.cmpf ogt, %160, %161 : vector<16x128xf32>
    %cst_26 = arith.constant 2.000000e-01 : f32
    %163 = vector.broadcast %cst_26 : f32 to vector<16x128xf32>
    %164 = arith.mulf %163, %160 : vector<16x128xf32>
    %165 = arith.select %162, %160, %164 : vector<16x128xi1>, vector<16x128xf32>
    %cst_27 = arith.constant 1.000000e+00 : f32
    %166 = vector.broadcast %cst_27 : f32 to vector<8x128xf32>
    %cst_28 = arith.constant dense<0.000000e+00> : vector<8x128xf32>
    %167 = tpu.matmul %166, %110, %cst_28 {dimension_numbers = #tpu.dot_dimension_numbers<[1], [1], [0], [0], [0, 0, 1, 0], [], []>} : vector<8x128xf32>, vector<128x128xf32>, vector<8x128xf32> -> vector<8x128xf32>
    %168 = vector.extract_strided_slice %167 {offsets = [0, 0], sizes = [1, 128], strides = [1, 1]} : vector<8x128xf32> to vector<1x128xf32>
    %c0_29 = arith.constant 0 : index
    %c0_30 = arith.constant 0 : index
    %169 = vector.load %arg7[%c0_29, %c0_30] : memref<16x16xf32, #tpu.memory_space<vmem>>, vector<16x16xf32>
    %c0_31 = arith.constant 0 : index
    %c0_32 = arith.constant 0 : index
    %170 = vector.load %arg8[%c0_31, %c0_32] : memref<8x16xf32, #tpu.memory_space<vmem>>, vector<8x16xf32>
    %c0_33 = arith.constant 0 : index
    %c0_34 = arith.constant 0 : index
    %171 = vector.load %arg9[%c0_33, %c0_34] : memref<8x1xf32, #tpu.memory_space<vmem>>, vector<8x1xf32>
    %172 = vector.extract_strided_slice %169 {offsets = [0, 0], sizes = [16, 1], strides = [1, 1]} : vector<16x16xf32> to vector<16x1xf32>
    %173 = vector.extract_strided_slice %165 {offsets = [0, 0], sizes = [1, 128], strides = [1, 1]} : vector<16x128xf32> to vector<1x128xf32>
    %174 = vector.broadcast %172 : vector<16x1xf32> to vector<16x128xf32>
    %175 = vector.broadcast %173 : vector<1x128xf32> to vector<16x128xf32>
    %176 = arith.mulf %174, %175 : vector<16x128xf32>
    %177 = vector.extract_strided_slice %169 {offsets = [0, 1], sizes = [16, 1], strides = [1, 1]} : vector<16x16xf32> to vector<16x1xf32>
    %178 = vector.extract_strided_slice %165 {offsets = [1, 0], sizes = [1, 128], strides = [1, 1]} : vector<16x128xf32> to vector<1x128xf32>
    %179 = vector.broadcast %177 : vector<16x1xf32> to vector<16x128xf32>
    %180 = vector.broadcast %178 : vector<1x128xf32> to vector<16x128xf32>
    %181 = arith.mulf %179, %180 : vector<16x128xf32>
    %182 = vector.extract_strided_slice %169 {offsets = [0, 2], sizes = [16, 1], strides = [1, 1]} : vector<16x16xf32> to vector<16x1xf32>
    %183 = vector.extract_strided_slice %165 {offsets = [2, 0], sizes = [1, 128], strides = [1, 1]} : vector<16x128xf32> to vector<1x128xf32>
    %184 = vector.broadcast %182 : vector<16x1xf32> to vector<16x128xf32>
    %185 = vector.broadcast %183 : vector<1x128xf32> to vector<16x128xf32>
    %186 = arith.mulf %184, %185 : vector<16x128xf32>
    %187 = vector.extract_strided_slice %169 {offsets = [0, 3], sizes = [16, 1], strides = [1, 1]} : vector<16x16xf32> to vector<16x1xf32>
    %188 = vector.extract_strided_slice %165 {offsets = [3, 0], sizes = [1, 128], strides = [1, 1]} : vector<16x128xf32> to vector<1x128xf32>
    %189 = vector.broadcast %187 : vector<16x1xf32> to vector<16x128xf32>
    %190 = vector.broadcast %188 : vector<1x128xf32> to vector<16x128xf32>
    %191 = arith.mulf %189, %190 : vector<16x128xf32>
    %192 = vector.extract_strided_slice %169 {offsets = [0, 4], sizes = [16, 1], strides = [1, 1]} : vector<16x16xf32> to vector<16x1xf32>
    %193 = vector.extract_strided_slice %165 {offsets = [4, 0], sizes = [1, 128], strides = [1, 1]} : vector<16x128xf32> to vector<1x128xf32>
    %194 = vector.broadcast %192 : vector<16x1xf32> to vector<16x128xf32>
    %195 = vector.broadcast %193 : vector<1x128xf32> to vector<16x128xf32>
    %196 = arith.mulf %194, %195 : vector<16x128xf32>
    %197 = vector.extract_strided_slice %169 {offsets = [0, 5], sizes = [16, 1], strides = [1, 1]} : vector<16x16xf32> to vector<16x1xf32>
    %198 = vector.extract_strided_slice %165 {offsets = [5, 0], sizes = [1, 128], strides = [1, 1]} : vector<16x128xf32> to vector<1x128xf32>
    %199 = vector.broadcast %197 : vector<16x1xf32> to vector<16x128xf32>
    %200 = vector.broadcast %198 : vector<1x128xf32> to vector<16x128xf32>
    %201 = arith.mulf %199, %200 : vector<16x128xf32>
    %202 = vector.extract_strided_slice %169 {offsets = [0, 6], sizes = [16, 1], strides = [1, 1]} : vector<16x16xf32> to vector<16x1xf32>
    %203 = vector.extract_strided_slice %165 {offsets = [6, 0], sizes = [1, 128], strides = [1, 1]} : vector<16x128xf32> to vector<1x128xf32>
    %204 = vector.broadcast %202 : vector<16x1xf32> to vector<16x128xf32>
    %205 = vector.broadcast %203 : vector<1x128xf32> to vector<16x128xf32>
    %206 = arith.mulf %204, %205 : vector<16x128xf32>
    %207 = vector.extract_strided_slice %169 {offsets = [0, 7], sizes = [16, 1], strides = [1, 1]} : vector<16x16xf32> to vector<16x1xf32>
    %208 = vector.extract_strided_slice %165 {offsets = [7, 0], sizes = [1, 128], strides = [1, 1]} : vector<16x128xf32> to vector<1x128xf32>
    %209 = vector.broadcast %207 : vector<16x1xf32> to vector<16x128xf32>
    %210 = vector.broadcast %208 : vector<1x128xf32> to vector<16x128xf32>
    %211 = arith.mulf %209, %210 : vector<16x128xf32>
    %212 = vector.extract_strided_slice %169 {offsets = [0, 8], sizes = [16, 1], strides = [1, 1]} : vector<16x16xf32> to vector<16x1xf32>
    %213 = vector.extract_strided_slice %165 {offsets = [8, 0], sizes = [1, 128], strides = [1, 1]} : vector<16x128xf32> to vector<1x128xf32>
    %214 = vector.broadcast %212 : vector<16x1xf32> to vector<16x128xf32>
    %215 = vector.broadcast %213 : vector<1x128xf32> to vector<16x128xf32>
    %216 = arith.mulf %214, %215 : vector<16x128xf32>
    %217 = vector.extract_strided_slice %169 {offsets = [0, 9], sizes = [16, 1], strides = [1, 1]} : vector<16x16xf32> to vector<16x1xf32>
    %218 = vector.extract_strided_slice %165 {offsets = [9, 0], sizes = [1, 128], strides = [1, 1]} : vector<16x128xf32> to vector<1x128xf32>
    %219 = vector.broadcast %217 : vector<16x1xf32> to vector<16x128xf32>
    %220 = vector.broadcast %218 : vector<1x128xf32> to vector<16x128xf32>
    %221 = arith.mulf %219, %220 : vector<16x128xf32>
    %222 = vector.extract_strided_slice %169 {offsets = [0, 10], sizes = [16, 1], strides = [1, 1]} : vector<16x16xf32> to vector<16x1xf32>
    %223 = vector.extract_strided_slice %165 {offsets = [10, 0], sizes = [1, 128], strides = [1, 1]} : vector<16x128xf32> to vector<1x128xf32>
    %224 = vector.broadcast %222 : vector<16x1xf32> to vector<16x128xf32>
    %225 = vector.broadcast %223 : vector<1x128xf32> to vector<16x128xf32>
    %226 = arith.mulf %224, %225 : vector<16x128xf32>
    %227 = vector.extract_strided_slice %169 {offsets = [0, 11], sizes = [16, 1], strides = [1, 1]} : vector<16x16xf32> to vector<16x1xf32>
    %228 = vector.extract_strided_slice %165 {offsets = [11, 0], sizes = [1, 128], strides = [1, 1]} : vector<16x128xf32> to vector<1x128xf32>
    %229 = vector.broadcast %227 : vector<16x1xf32> to vector<16x128xf32>
    %230 = vector.broadcast %228 : vector<1x128xf32> to vector<16x128xf32>
    %231 = arith.mulf %229, %230 : vector<16x128xf32>
    %232 = vector.extract_strided_slice %169 {offsets = [0, 12], sizes = [16, 1], strides = [1, 1]} : vector<16x16xf32> to vector<16x1xf32>
    %233 = vector.extract_strided_slice %165 {offsets = [12, 0], sizes = [1, 128], strides = [1, 1]} : vector<16x128xf32> to vector<1x128xf32>
    %234 = vector.broadcast %232 : vector<16x1xf32> to vector<16x128xf32>
    %235 = vector.broadcast %233 : vector<1x128xf32> to vector<16x128xf32>
    %236 = arith.mulf %234, %235 : vector<16x128xf32>
    %237 = vector.extract_strided_slice %169 {offsets = [0, 13], sizes = [16, 1], strides = [1, 1]} : vector<16x16xf32> to vector<16x1xf32>
    %238 = vector.extract_strided_slice %165 {offsets = [13, 0], sizes = [1, 128], strides = [1, 1]} : vector<16x128xf32> to vector<1x128xf32>
    %239 = vector.broadcast %237 : vector<16x1xf32> to vector<16x128xf32>
    %240 = vector.broadcast %238 : vector<1x128xf32> to vector<16x128xf32>
    %241 = arith.mulf %239, %240 : vector<16x128xf32>
    %242 = vector.extract_strided_slice %169 {offsets = [0, 14], sizes = [16, 1], strides = [1, 1]} : vector<16x16xf32> to vector<16x1xf32>
    %243 = vector.extract_strided_slice %165 {offsets = [14, 0], sizes = [1, 128], strides = [1, 1]} : vector<16x128xf32> to vector<1x128xf32>
    %244 = vector.broadcast %242 : vector<16x1xf32> to vector<16x128xf32>
    %245 = vector.broadcast %243 : vector<1x128xf32> to vector<16x128xf32>
    %246 = arith.mulf %244, %245 : vector<16x128xf32>
    %247 = vector.extract_strided_slice %169 {offsets = [0, 15], sizes = [16, 1], strides = [1, 1]} : vector<16x16xf32> to vector<16x1xf32>
    %248 = vector.extract_strided_slice %165 {offsets = [15, 0], sizes = [1, 128], strides = [1, 1]} : vector<16x128xf32> to vector<1x128xf32>
    %249 = vector.broadcast %247 : vector<16x1xf32> to vector<16x128xf32>
    %250 = vector.broadcast %248 : vector<1x128xf32> to vector<16x128xf32>
    %251 = arith.mulf %249, %250 : vector<16x128xf32>
    %252 = arith.addf %176, %181 : vector<16x128xf32>
    %253 = arith.addf %186, %191 : vector<16x128xf32>
    %254 = arith.addf %196, %201 : vector<16x128xf32>
    %255 = arith.addf %206, %211 : vector<16x128xf32>
    %256 = arith.addf %216, %221 : vector<16x128xf32>
    %257 = arith.addf %226, %231 : vector<16x128xf32>
    %258 = arith.addf %236, %241 : vector<16x128xf32>
    %259 = arith.addf %246, %251 : vector<16x128xf32>
    %260 = arith.addf %252, %253 : vector<16x128xf32>
    %261 = arith.addf %254, %255 : vector<16x128xf32>
    %262 = arith.addf %256, %257 : vector<16x128xf32>
    %263 = arith.addf %258, %259 : vector<16x128xf32>
    %264 = arith.addf %260, %261 : vector<16x128xf32>
    %265 = arith.addf %262, %263 : vector<16x128xf32>
    %266 = arith.addf %264, %265 : vector<16x128xf32>
    %267 = arith.mulf %266, %266 : vector<16x128xf32>
    %cst_35 = arith.constant dense<0.000000e+00> : vector<128xf32>
    %268 = vector.multi_reduction <add>, %267, %cst_35 [0] : vector<16x128xf32> to vector<128xf32>
    %269 = vector.shape_cast %268 : vector<128xf32> to vector<1x128xf32>
    %270 = arith.addf %269, %2 : vector<1x128xf32>
    %271 = tpu.iota {dimensions = array<i32: 0>} : vector<8x128xi32>
    %c0_i32_36 = arith.constant 0 : i32
    %272 = vector.broadcast %c0_i32_36 : i32 to vector<8x128xi32>
    %273 = arith.cmpi eq, %271, %272 : vector<8x128xi32>
    %274 = arith.extui %273 : vector<8x128xi1> to vector<8x128xi32>
    %275 = arith.sitofp %274 : vector<8x128xi32> to vector<8x128xf32>
    %c1_i32_37 = arith.constant 1 : i32
    %276 = vector.broadcast %c1_i32_37 : i32 to vector<8x128xi32>
    %277 = arith.cmpi eq, %271, %276 : vector<8x128xi32>
    %278 = arith.extui %277 : vector<8x128xi1> to vector<8x128xi32>
    %279 = arith.sitofp %278 : vector<8x128xi32> to vector<8x128xf32>
    %280 = vector.broadcast %270 : vector<1x128xf32> to vector<8x128xf32>
    %281 = arith.mulf %279, %280 : vector<8x128xf32>
    %282 = arith.addf %275, %281 : vector<8x128xf32>
    %283 = vector.broadcast %270 : vector<1x128xf32> to vector<8x128xf32>
    %284 = arith.mulf %275, %283 : vector<8x128xf32>
    %285 = arith.addf %284, %279 : vector<8x128xf32>
    %cst_38 = arith.constant -2.000000e+00 : f32
    %286 = vector.broadcast %cst_38 : f32 to vector<16x128xf32>
    %287 = arith.mulf %286, %266 : vector<16x128xf32>
    %288 = tpu.concatenate %287, %282 in 0 : vector<16x128xf32>, vector<8x128xf32> -> vector<24x128xf32>
    %289 = tpu.concatenate %266, %285 in 0 : vector<16x128xf32>, vector<8x128xf32> -> vector<24x128xf32>
    %cst_39 = arith.constant dense<0.000000e+00> : vector<128x128xf32>
    %290 = tpu.matmul %288, %289, %cst_39 {dimension_numbers = #tpu.dot_dimension_numbers<[0], [0], [1], [1], [0, 1, 1, 1], [], []>} : vector<24x128xf32>, vector<24x128xf32>, vector<128x128xf32> -> vector<128x128xf32>
    %cst_40 = arith.constant 0.000000e+00 : f32
    %291 = vector.broadcast %cst_40 : f32 to vector<128x128xf32>
    %292 = arith.subf %291, %290 : vector<128x128xf32>
    %293 = math.exp %292 : vector<128x128xf32>
    %cst_41 = arith.constant dense<0.000000e+00> : vector<128xf32>
    %294 = vector.multi_reduction <add>, %293, %cst_41 [1] : vector<128x128xf32> to vector<128xf32>
    %295 = vector.shape_cast %294 : vector<128xf32> to vector<128x1xf32>
    %cst_42 = arith.constant 1.000000e+00 : f32
    %296 = vector.broadcast %cst_42 : f32 to vector<128x1xf32>
    %297 = arith.maximumf %295, %296 : vector<128x1xf32>
    %298 = math.rsqrt %297 : vector<128x1xf32>
    %cst_43 = arith.constant dense<0.000000e+00> : vector<128xf32>
    %299 = vector.multi_reduction <add>, %293, %cst_43 [0] : vector<128x128xf32> to vector<128xf32>
    %300 = vector.shape_cast %299 : vector<128xf32> to vector<1x128xf32>
    %cst_44 = arith.constant 1.000000e+00 : f32
    %301 = vector.broadcast %cst_44 : f32 to vector<1x128xf32>
    %302 = arith.maximumf %300, %301 : vector<1x128xf32>
    %303 = math.rsqrt %302 : vector<1x128xf32>
    %304 = vector.broadcast %298 : vector<128x1xf32> to vector<128x128xf32>
    %305 = arith.mulf %304, %293 : vector<128x128xf32>
    %306 = vector.broadcast %303 : vector<1x128xf32> to vector<128x128xf32>
    %307 = arith.mulf %305, %306 : vector<128x128xf32>
    %308 = arith.addf %307, %110 : vector<128x128xf32>
    %cst_45 = arith.constant dense<0.000000e+00> : vector<128xf32>
    %309 = vector.multi_reduction <add>, %308, %cst_45 [1] : vector<128x128xf32> to vector<128xf32>
    %310 = vector.shape_cast %309 : vector<128xf32> to vector<128x1xf32>
    %cst_46 = arith.constant dense<0.000000e+00> : vector<128xf32>
    %311 = vector.multi_reduction <add>, %307, %cst_46 [0] : vector<128x128xf32> to vector<128xf32>
    %312 = vector.shape_cast %311 : vector<128xf32> to vector<1x128xf32>
    %313 = arith.addf %312, %168 : vector<1x128xf32>
    %cst_47 = arith.constant 1.000000e+00 : f32
    %314 = vector.broadcast %cst_47 : f32 to vector<128x1xf32>
    %315 = arith.maximumf %310, %314 : vector<128x1xf32>
    %316 = math.rsqrt %315 : vector<128x1xf32>
    %cst_48 = arith.constant 1.000000e+00 : f32
    %317 = vector.broadcast %cst_48 : f32 to vector<1x128xf32>
    %318 = arith.maximumf %313, %317 : vector<1x128xf32>
    %319 = math.rsqrt %318 : vector<1x128xf32>
    %320 = vector.broadcast %316 : vector<128x1xf32> to vector<128x128xf32>
    %321 = arith.mulf %320, %308 : vector<128x128xf32>
    %322 = vector.broadcast %319 : vector<1x128xf32> to vector<128x128xf32>
    %323 = arith.mulf %321, %322 : vector<128x128xf32>
    %324 = vector.extract_strided_slice %170 {offsets = [0, 0], sizes = [8, 1], strides = [1, 1]} : vector<8x16xf32> to vector<8x1xf32>
    %325 = vector.extract_strided_slice %165 {offsets = [0, 0], sizes = [1, 128], strides = [1, 1]} : vector<16x128xf32> to vector<1x128xf32>
    %326 = vector.broadcast %324 : vector<8x1xf32> to vector<8x128xf32>
    %327 = vector.broadcast %325 : vector<1x128xf32> to vector<8x128xf32>
    %328 = arith.mulf %326, %327 : vector<8x128xf32>
    %329 = vector.extract_strided_slice %170 {offsets = [0, 1], sizes = [8, 1], strides = [1, 1]} : vector<8x16xf32> to vector<8x1xf32>
    %330 = vector.extract_strided_slice %165 {offsets = [1, 0], sizes = [1, 128], strides = [1, 1]} : vector<16x128xf32> to vector<1x128xf32>
    %331 = vector.broadcast %329 : vector<8x1xf32> to vector<8x128xf32>
    %332 = vector.broadcast %330 : vector<1x128xf32> to vector<8x128xf32>
    %333 = arith.mulf %331, %332 : vector<8x128xf32>
    %334 = vector.extract_strided_slice %170 {offsets = [0, 2], sizes = [8, 1], strides = [1, 1]} : vector<8x16xf32> to vector<8x1xf32>
    %335 = vector.extract_strided_slice %165 {offsets = [2, 0], sizes = [1, 128], strides = [1, 1]} : vector<16x128xf32> to vector<1x128xf32>
    %336 = vector.broadcast %334 : vector<8x1xf32> to vector<8x128xf32>
    %337 = vector.broadcast %335 : vector<1x128xf32> to vector<8x128xf32>
    %338 = arith.mulf %336, %337 : vector<8x128xf32>
    %339 = vector.extract_strided_slice %170 {offsets = [0, 3], sizes = [8, 1], strides = [1, 1]} : vector<8x16xf32> to vector<8x1xf32>
    %340 = vector.extract_strided_slice %165 {offsets = [3, 0], sizes = [1, 128], strides = [1, 1]} : vector<16x128xf32> to vector<1x128xf32>
    %341 = vector.broadcast %339 : vector<8x1xf32> to vector<8x128xf32>
    %342 = vector.broadcast %340 : vector<1x128xf32> to vector<8x128xf32>
    %343 = arith.mulf %341, %342 : vector<8x128xf32>
    %344 = vector.extract_strided_slice %170 {offsets = [0, 4], sizes = [8, 1], strides = [1, 1]} : vector<8x16xf32> to vector<8x1xf32>
    %345 = vector.extract_strided_slice %165 {offsets = [4, 0], sizes = [1, 128], strides = [1, 1]} : vector<16x128xf32> to vector<1x128xf32>
    %346 = vector.broadcast %344 : vector<8x1xf32> to vector<8x128xf32>
    %347 = vector.broadcast %345 : vector<1x128xf32> to vector<8x128xf32>
    %348 = arith.mulf %346, %347 : vector<8x128xf32>
    %349 = vector.extract_strided_slice %170 {offsets = [0, 5], sizes = [8, 1], strides = [1, 1]} : vector<8x16xf32> to vector<8x1xf32>
    %350 = vector.extract_strided_slice %165 {offsets = [5, 0], sizes = [1, 128], strides = [1, 1]} : vector<16x128xf32> to vector<1x128xf32>
    %351 = vector.broadcast %349 : vector<8x1xf32> to vector<8x128xf32>
    %352 = vector.broadcast %350 : vector<1x128xf32> to vector<8x128xf32>
    %353 = arith.mulf %351, %352 : vector<8x128xf32>
    %354 = vector.extract_strided_slice %170 {offsets = [0, 6], sizes = [8, 1], strides = [1, 1]} : vector<8x16xf32> to vector<8x1xf32>
    %355 = vector.extract_strided_slice %165 {offsets = [6, 0], sizes = [1, 128], strides = [1, 1]} : vector<16x128xf32> to vector<1x128xf32>
    %356 = vector.broadcast %354 : vector<8x1xf32> to vector<8x128xf32>
    %357 = vector.broadcast %355 : vector<1x128xf32> to vector<8x128xf32>
    %358 = arith.mulf %356, %357 : vector<8x128xf32>
    %359 = vector.extract_strided_slice %170 {offsets = [0, 7], sizes = [8, 1], strides = [1, 1]} : vector<8x16xf32> to vector<8x1xf32>
    %360 = vector.extract_strided_slice %165 {offsets = [7, 0], sizes = [1, 128], strides = [1, 1]} : vector<16x128xf32> to vector<1x128xf32>
    %361 = vector.broadcast %359 : vector<8x1xf32> to vector<8x128xf32>
    %362 = vector.broadcast %360 : vector<1x128xf32> to vector<8x128xf32>
    %363 = arith.mulf %361, %362 : vector<8x128xf32>
    %364 = vector.extract_strided_slice %170 {offsets = [0, 8], sizes = [8, 1], strides = [1, 1]} : vector<8x16xf32> to vector<8x1xf32>
    %365 = vector.extract_strided_slice %165 {offsets = [8, 0], sizes = [1, 128], strides = [1, 1]} : vector<16x128xf32> to vector<1x128xf32>
    %366 = vector.broadcast %364 : vector<8x1xf32> to vector<8x128xf32>
    %367 = vector.broadcast %365 : vector<1x128xf32> to vector<8x128xf32>
    %368 = arith.mulf %366, %367 : vector<8x128xf32>
    %369 = vector.extract_strided_slice %170 {offsets = [0, 9], sizes = [8, 1], strides = [1, 1]} : vector<8x16xf32> to vector<8x1xf32>
    %370 = vector.extract_strided_slice %165 {offsets = [9, 0], sizes = [1, 128], strides = [1, 1]} : vector<16x128xf32> to vector<1x128xf32>
    %371 = vector.broadcast %369 : vector<8x1xf32> to vector<8x128xf32>
    %372 = vector.broadcast %370 : vector<1x128xf32> to vector<8x128xf32>
    %373 = arith.mulf %371, %372 : vector<8x128xf32>
    %374 = vector.extract_strided_slice %170 {offsets = [0, 10], sizes = [8, 1], strides = [1, 1]} : vector<8x16xf32> to vector<8x1xf32>
    %375 = vector.extract_strided_slice %165 {offsets = [10, 0], sizes = [1, 128], strides = [1, 1]} : vector<16x128xf32> to vector<1x128xf32>
    %376 = vector.broadcast %374 : vector<8x1xf32> to vector<8x128xf32>
    %377 = vector.broadcast %375 : vector<1x128xf32> to vector<8x128xf32>
    %378 = arith.mulf %376, %377 : vector<8x128xf32>
    %379 = vector.extract_strided_slice %170 {offsets = [0, 11], sizes = [8, 1], strides = [1, 1]} : vector<8x16xf32> to vector<8x1xf32>
    %380 = vector.extract_strided_slice %165 {offsets = [11, 0], sizes = [1, 128], strides = [1, 1]} : vector<16x128xf32> to vector<1x128xf32>
    %381 = vector.broadcast %379 : vector<8x1xf32> to vector<8x128xf32>
    %382 = vector.broadcast %380 : vector<1x128xf32> to vector<8x128xf32>
    %383 = arith.mulf %381, %382 : vector<8x128xf32>
    %384 = vector.extract_strided_slice %170 {offsets = [0, 12], sizes = [8, 1], strides = [1, 1]} : vector<8x16xf32> to vector<8x1xf32>
    %385 = vector.extract_strided_slice %165 {offsets = [12, 0], sizes = [1, 128], strides = [1, 1]} : vector<16x128xf32> to vector<1x128xf32>
    %386 = vector.broadcast %384 : vector<8x1xf32> to vector<8x128xf32>
    %387 = vector.broadcast %385 : vector<1x128xf32> to vector<8x128xf32>
    %388 = arith.mulf %386, %387 : vector<8x128xf32>
    %389 = vector.extract_strided_slice %170 {offsets = [0, 13], sizes = [8, 1], strides = [1, 1]} : vector<8x16xf32> to vector<8x1xf32>
    %390 = vector.extract_strided_slice %165 {offsets = [13, 0], sizes = [1, 128], strides = [1, 1]} : vector<16x128xf32> to vector<1x128xf32>
    %391 = vector.broadcast %389 : vector<8x1xf32> to vector<8x128xf32>
    %392 = vector.broadcast %390 : vector<1x128xf32> to vector<8x128xf32>
    %393 = arith.mulf %391, %392 : vector<8x128xf32>
    %394 = vector.extract_strided_slice %170 {offsets = [0, 14], sizes = [8, 1], strides = [1, 1]} : vector<8x16xf32> to vector<8x1xf32>
    %395 = vector.extract_strided_slice %165 {offsets = [14, 0], sizes = [1, 128], strides = [1, 1]} : vector<16x128xf32> to vector<1x128xf32>
    %396 = vector.broadcast %394 : vector<8x1xf32> to vector<8x128xf32>
    %397 = vector.broadcast %395 : vector<1x128xf32> to vector<8x128xf32>
    %398 = arith.mulf %396, %397 : vector<8x128xf32>
    %399 = vector.extract_strided_slice %170 {offsets = [0, 15], sizes = [8, 1], strides = [1, 1]} : vector<8x16xf32> to vector<8x1xf32>
    %400 = vector.extract_strided_slice %165 {offsets = [15, 0], sizes = [1, 128], strides = [1, 1]} : vector<16x128xf32> to vector<1x128xf32>
    %401 = vector.broadcast %399 : vector<8x1xf32> to vector<8x128xf32>
    %402 = vector.broadcast %400 : vector<1x128xf32> to vector<8x128xf32>
    %403 = arith.mulf %401, %402 : vector<8x128xf32>
    %404 = arith.addf %328, %333 : vector<8x128xf32>
    %405 = arith.addf %338, %343 : vector<8x128xf32>
    %406 = arith.addf %348, %353 : vector<8x128xf32>
    %407 = arith.addf %358, %363 : vector<8x128xf32>
    %408 = arith.addf %368, %373 : vector<8x128xf32>
    %409 = arith.addf %378, %383 : vector<8x128xf32>
    %410 = arith.addf %388, %393 : vector<8x128xf32>
    %411 = arith.addf %398, %403 : vector<8x128xf32>
    %412 = arith.addf %404, %405 : vector<8x128xf32>
    %413 = arith.addf %406, %407 : vector<8x128xf32>
    %414 = arith.addf %408, %409 : vector<8x128xf32>
    %415 = arith.addf %410, %411 : vector<8x128xf32>
    %416 = arith.addf %412, %413 : vector<8x128xf32>
    %417 = arith.addf %414, %415 : vector<8x128xf32>
    %418 = arith.addf %416, %417 : vector<8x128xf32>
    %cst_49 = arith.constant dense<0.000000e+00> : vector<8x128xf32>
    %419 = tpu.matmul %418, %323, %cst_49 {dimension_numbers = #tpu.dot_dimension_numbers<[1], [1], [0], [0], [0, 0, 1, 0], [], []>} : vector<8x128xf32>, vector<128x128xf32>, vector<8x128xf32> -> vector<8x128xf32>
    %420 = vector.broadcast %171 : vector<8x1xf32> to vector<8x128xf32>
    %421 = arith.addf %419, %420 : vector<8x128xf32>
    %c0_50 = arith.constant 0 : index
    %c0_51 = arith.constant 0 : index
    %422 = vector.load %arg10[%c0_50, %c0_51] : memref<8x128xf32, #tpu.memory_space<vmem>>, vector<8x128xf32>
    tpu.vector_store %arg10[%c0_50, %c0_51], %421 {strides = array<i32>} : memref<8x128xf32, #tpu.memory_space<vmem>>, vector<8x128xf32>,
    %c0_52 = arith.constant 0 : index
    %c0_53 = arith.constant 0 : index
    %423 = vector.load %arg11[%c0_52, %c0_53] : memref<128x128xf32, #tpu.memory_space<vmem>>, vector<128x128xf32>
    tpu.vector_store %arg11[%c0_52, %c0_53], %110 {strides = array<i32>} : memref<128x128xf32, #tpu.memory_space<vmem>>, vector<128x128xf32>,
    %c0_54 = arith.constant 0 : index
    %c0_55 = arith.constant 0 : index
    %424 = vector.load %arg12[%c0_54, %c0_55] : memref<128x128xf32, #tpu.memory_space<vmem>>, vector<128x128xf32>
    tpu.vector_store %arg12[%c0_54, %c0_55], %323 {strides = array<i32>} : memref<128x128xf32, #tpu.memory_space<vmem>>, vector<128x128xf32>,
    return
  }
}

</mosaic_0001>

<bundles_post_ra>
// kernel: jgcn_forward.1
= control target key start
LH: loop header
LB: loop body
LE: loop exit
PB: predicated region body
PF: predicated region fallthrough
CT: control target
= control target key end

     0   :  { %v3933_v0 = vmov 1   ;;  %v3915_v1 = vmov 0   ;;  %v3930_v4 = vmov 2   ;;  %v3929_v5 = vmov 3   ;;  %s3902_s4 = inlined_call_operand.vmem [shape: f32[16,8], index: 4, kind: input, shape index: {}]   ;;  %s3903_s0 = inlined_call_operand.vmem [shape: f32[8,128], index: 0, kind: input, shape index: {}]   ;;  %s3904_s3 = inlined_call_operand.vmem [shape: f32[1,128], index: 3, kind: input, shape index: {}]   ;;  %s3905_s1 = inlined_call_operand.vmem [shape: f32[128,128], index: 1, kind: input, shape index: {}]   ;;  %s3906_s5 = inlined_call_operand.vmem [shape: f32[16,8], index: 5, kind: input, shape index: {}]   ;;  %s3907_s6 = inlined_call_operand.vmem [shape: f32[16,1], index: 6, kind: input, shape index: {}]   ;;  %s3908_s7 = inlined_call_operand.vmem [shape: f32[16,16], index: 7, kind: input, shape index: {}]   ;;  %s3909_s2 = inlined_call_operand.vmem [shape: f32[1,128], index: 2, kind: input, shape index: {}]   ;;  %s3910_s11 = inlined_call_operand.vmem [shape: f32[128,128], index: 11, kind: output, shape index: {1}]   ;;  %s3911_s8 = inlined_call_operand.vmem [shape: f32[8,16], index: 8, kind: input, shape index: {}]   ;;  %s3912_s9 = inlined_call_operand.vmem [shape: f32[8,1], index: 9, kind: input, shape index: {}]   ;;  %s3913_s12 = inlined_call_operand.vmem [shape: f32[128,128], index: 12, kind: output, shape index: {2}]   ;;  %s3914_s10 = inlined_call_operand.vmem [shape: f32[8,128], index: 10, kind: output, shape index: {0}]  }
   0x1   :  { %2374 = vset.pattern.permute.xlu1 %v3933_v0  ;;  %2373 = vset.pattern.permute.xlu0 %v3915_v1  ;;  %v57_v2 = vld [vmem:[%s3902_s4] sm:$0xff]  ;;  %v58_v3 = vld [vmem:[%s3902_s4 + $0x8] sm:$0xff]  ;;  %v3928_v6 = vmov 4   ;;  %v3927_v7 = vmov 5   ;;  %v3926_v8 = vmov 6   ;;  %v3925_v9 = vmov 7  }
   0x2   :  { %80 = vperm.xlu1 %2374, %v57_v2   ;;  %65 = vperm.xlu0 %2373, %v57_v2   ;;  %v3931_v10 = vmov 0.0   ;;  %v73_v18 = vlaneseq  ;;  %v38_v27 = vld [vmem:[%s3903_s0] sm:$0xff]  ;;  %vm251_vm2 = vcmask 195584   ;;  %vm2662_vm3 = vmmov 0  }
   0x3   :  { %2254 = vmatprep.subr.mxu0 %v3931_v10  ;;  %2286 = vmatprep.mubr.msk.f32.mxu0 %vm2662_vm3, %v3931_v10 }
   0x4   :  { %v2757_v21 = vshrl.u32 %v73_v18, 7 }
   0x6   :  { %84 = vperm.xlu1 %2374, %v58_v3   ;;  %70 = vperm.xlu0 %2373, %v58_v3   ;;  %v2760_v22 = vsub.s32 3, %v2757_v21  ;;  %v2763_v23 = vsub.s32 1, %v2757_v21  ;;  %v2766_v24 = vsub.s32 0, %v2757_v21  ;;  %v2772_v28 = vsub.s32 2, %v2757_v21 }
   0x7   :  { %v2775_v29 = vsub.s32 4, %v2757_v21  ;;  %v2778_v30 = vsub.s32 5, %v2757_v21  ;;  %v2782_v32 = vsub.s32 6, %v2757_v21  ;;  %v2785_v33 = vsub.s32 7, %v2757_v21 }
   0x8   :  { %v118_v31 = vrot.slane %v38_v27, %v2760_v22  ;;  %v90_v34 = vrot.slane %v38_v27, %v2763_v23  ;;  %v76_v35 = vrot.slane %v38_v27, %v2766_v24  ;;  %v104_v36 = vrot.slane %v38_v27, %v2772_v28 }
   0x9   :  { %v132_v37 = vrot.slane %v38_v27, %v2775_v29  ;;  %v146_v38 = vrot.slane %v38_v27, %v2778_v30  ;;  %v160_v43 = vrot.slane %v38_v27, %v2782_v32  ;;  %v174_v44 = vrot.slane %v38_v27, %v2785_v33 }
   0xa   :  { %2376 = vset.pattern.permute.xlu1 %v3930_v4  ;;  %2375 = vset.pattern.permute.xlu0 %v3930_v4  ;;  %vm203_vm0 = vcmp.eq.s32.totalorder %v2757_v21, 0  ;;  %vm206_vm1 = vcmp.eq.s32.totalorder %v2757_v21, 1 }
   0xb   :  { %98 = vperm.xlu1 %2376, %v58_v3   ;;  %94 = vperm.xlu0 %2375, %v57_v2  }
   0xf   :  { %2377 = vset.pattern.permute.xlu1 %v3929_v5  ;;  %2378 = vset.pattern.permute.xlu0 %v3929_v5 }
  0x10   :  { %108 = vperm.xlu1 %2377, %v57_v2   ;;  %112 = vperm.xlu0 %2378, %v58_v3  }
  0x14   :  { %2379 = vset.pattern.permute.xlu1 %v3928_v6  ;;  %2380 = vset.pattern.permute.xlu0 %v3927_v7 }
  0x15   :  { %122 = vperm.xlu1 %2379, %v57_v2   ;;  %136 = vperm.xlu0 %2380, %v57_v2  }
  0x19   :  { %126 = vperm.xlu1 %2379, %v58_v3   ;;  %2383 = vset.pattern.permute.xlu0 %v3926_v8 }
  0x1a   :  { %154 = vperm.xlu0 %2383, %v58_v3  }
  0x1d   :  { %2381 = vset.pattern.permute.xlu1 %v3927_v7 }
  0x1e   :  { %140 = vperm.xlu1 %2381, %v58_v3  }
  0x22   :  { %2382 = vset.pattern.permute.xlu1 %v3926_v8 }
  0x23   :  { %150 = vperm.xlu1 %2382, %v57_v2  }
  0x27   :  { %2384 = vset.pattern.permute.xlu1 %v3925_v9 }
  0x28   :  { %164 = vperm.xlu1 %2384, %v57_v2  }
  0x2c   :  { %168 = vperm.xlu1 %2384, %v58_v3  }
  0x30   :  { %2385 = vset.pattern.permute.xlu1 %v3915_v1 }
  0x7d   :  { %v81_v11 = vpop.permute.xlu1 %80  ;;  %v66_v14 = vpop.permute.xlu0 %65 }
  0x7e   :  { %v91_v45 = vmul.f32 %v90_v34, %v81_v11  ;;  %v77_v46 = vmul.f32 %v76_v35, %v66_v14 }
  0x80   :  { %v177_v55 = vadd.f32 %v91_v45, %v77_v46 }
  0x81   :  { %v85_v12 = vpop.permute.xlu1 %84  ;;  %v71_v16 = vpop.permute.xlu0 %70 }
  0x82   :  { %v92_v56 = vmul.f32 %v90_v34, %v85_v12  ;;  %v78_v57 = vmul.f32 %v76_v35, %v71_v16 }
  0x86   :  { %v99_v13 = vpop.permute.xlu1 %98  ;;  %v95_v19 = vpop.permute.xlu0 %94 }
  0x87   :  { %v105_v41 = vmul.f32 %v104_v36, %v95_v19  ;;  %v106_v58 = vmul.f32 %v104_v36, %v99_v13 }
  0x8b   :  { %v109_v15 = vpop.permute.xlu1 %108  ;;  %v113_v25 = vpop.permute.xlu0 %112 }
  0x8c   :  { %v119_v42 = vmul.f32 %v118_v31, %v109_v15  ;;  %v120_v49 = vmul.f32 %v118_v31, %v113_v25 }
  0x8e   :  { %v179_v52 = vadd.f32 %v119_v42, %v105_v41  ;;  %v180_v63 = vadd.f32 %v120_v49, %v106_v58 }
  0x90   :  { %v123_v17 = vpop.permute.xlu1 %122  ;;  %v137_v40 = vpop.permute.xlu0 %136  ;;  %v185_v3 = vadd.f32 %v179_v52, %v177_v55 }
  0x91   :  { %v133_v47 = vmul.f32 %v132_v37, %v123_v17  ;;  %v147_v48 = vmul.f32 %v146_v38, %v137_v40  ;;  %v178_v17 = vadd.f32 %v92_v56, %v78_v57  ;;  %v55_v40 = vld [vmem:[%s3904_s3] sm:$0x1] }
  0x93   :  { %v181_v59 = vadd.f32 %v147_v48, %v133_v47  ;;  %v186_v27 = vadd.f32 %v180_v63, %v178_v17 }
  0x94   :  { %v127_v20 = vpop.permute.xlu1 %126 }
  0x95   :  { %v155_v51 = vpop.permute.xlu0 %154  ;;  %v134_v11 = vmul.f32 %v132_v37, %v127_v20 }
  0x96   :  { %v162_v62 = vmul.f32 %v160_v43, %v155_v51 }
  0x99   :  { %v141_v26 = vpop.permute.xlu1 %140 }
  0x9a   :  { %v148_v60 = vmul.f32 %v146_v38, %v141_v26 }
  0x9c   :  { %v182_v18 = vadd.f32 %v148_v60, %v134_v11 }
  0x9e   :  { %v151_v39 = vpop.permute.xlu1 %150 }
  0x9f   :  { %v161_v53 = vmul.f32 %v160_v43, %v151_v39  ;;  %v2800_v43 = vsel %vm203_vm0, 1.0, %v3931_v10 }
  0xa0   :  { %3942 = vst [vmem:[#allocation2_spill] sm:$0xff] %v2800_v43 }
  0xa3   :  { %v165_v50 = vpop.permute.xlu1 %164 }
  0xa4   :  { %v175_v54 = vmul.f32 %v174_v44, %v165_v50 }
  0xa6   :  { %v183_v61 = vadd.f32 %v175_v54, %v161_v53 }
  0xa7   :  { %v169_v2 = vpop.permute.xlu1 %168 }
  0xa8   :  { %v187_v14 = vadd.f32 %v183_v61, %v181_v59  ;;  %v176_v15 = vmul.f32 %v174_v44, %v169_v2  ;;  %v2803_v44 = vsel %vm206_vm1, 1.0, %v3931_v10 }
  0xa9   :  { %3943 = vst [vmem:[#allocation3_spill] sm:$0xff] %v2803_v44 }
  0xaa   :  { %v189_v19 = vadd.f32 %v187_v14, %v185_v3  ;;  %v184_v25 = vadd.f32 %v176_v15, %v162_v62 }
  0xac   :  { %v188_v31 = vadd.f32 %v184_v25, %v182_v18  ;;  %v217_v39 = vmul.f32 -2.0, %v189_v19  ;;  %v191_v13 = vmul.f32 %v189_v19, %v189_v19 }
  0xae   :  { %v190_v12 = vadd.f32 %v188_v31, %v186_v27  ;;  %219 = vxpose.xlu0.b32.start [1/3] (short) %v217_v39, 128 }
  0xb0   :  { %v192_v16 = vmul.f32 %v190_v12, %v190_v12  ;;  %v218_v26 = vmul.f32 -2.0, %v190_v12 }
  0xb2   :  { %220 = vxpose.xlu0.b32.cont [2/3] (short) %v218_v26, 128  ;;  %v193_v34 = vadd.f32 %v192_v16, %v191_v13 }
  0xb4   :  { %v194_v35 = vrot.slane %v193_v34, 4 }
  0xb6   :  { %v195_v36 = vadd.f32 %v194_v35, %v193_v34 }
  0xb8   :  { %v196_v38 = vrot.slane %v195_v36, 2 }
  0xba   :  { %v197_v20 = vadd.f32 %v196_v38, %v195_v36 }
  0xbc   :  { %v198_v37 = vrot.slane %v197_v20, 1 }
  0xbe   :  { %v199_v41 = vadd.f32 %v198_v37, %v197_v20 }
  0xc0   :  { %v200_v42 = vadd.f32 %v199_v41, %v55_v40 }
  0xc2   :  { %v212_v45 = vrot.slane %v200_v42, %v2766_v24 }
  0xc4   :  { %v213_v46 = vmul.f32 %v2803_v44, %v212_v45  ;;  %v215_v47 = vmul.f32 %v2800_v43, %v212_v45 }
  0xc6   :  { %v216_v48 = vadd.f32 %v2803_v44, %v215_v47  ;;  %v214_v49 = vadd.f32 %v2800_v43, %v213_v46 }
  0xc8   :  { %2189 = vmatprep.subr.mxu1 %v216_v48  ;;  %221 = vxpose.xlu0.b32.end [3/3] (short) %v214_v49, 128 }
  0xc9   :  { %2190 = vmatpush3.msra.mxu1 %v216_v48 }
  0xca   :  { %2191 = vmatprep.subr.mxu1 %v190_v12 }
  0xcb   :  { %2192 = vmatpush3.msra.mxu1 %v190_v12 }
  0xcc   :  { %2193 = vmatprep.subr.mxu1 %v189_v19 }
  0xcd   :  { %2194 = vmatpush3.msra.mxu1 %v189_v19 }
  0xce   :  { %2219 = vmatprep.subr.mxu1 %v3931_v10 }
  0xf1   :  { %2390 = vset.pattern.permute.xlu0 %v3927_v7 }
 0x13c   :  { %v235_v21 = vpop.trf.xlu0 }
 0x13d   :  { %2195 = vmatprep.mubr.msk.f32.mxu1 %vm251_vm2, %v235_v21 }
 0x140   :  { %v236_v50 = vpop.trf.xlu0 }
 0x141   :  { %2196 = vmatmul.mubr.msk.f32.vlgmr.msra.gmra.mxu1 %vm251_vm2, %v236_v50 }
 0x144   :  { %v237_v51 = vpop.trf.xlu0 }
 0x145   :  { %2198 = vmatprep.mubr.msk.f32.mxu1 %vm251_vm2, %v237_v51 }
 0x148   :  { %v238_v52 = vpop.trf.xlu0 }
 0x149   :  { %2199 = vmatmul.mubr.msk.f32.gmra.mxu1 %vm251_vm2, %v238_v52 }
 0x14c   :  { %v239_v53 = vpop.trf.xlu0 }
 0x14d   :  { %2201 = vmatprep.mubr.msk.f32.mxu1 %vm251_vm2, %v239_v53 }
 0x150   :  { %v240_v54 = vpop.trf.xlu0 }
 0x151   :  { %2202 = vmatmul.mubr.msk.f32.gmra.mxu1 %vm251_vm2, %v240_v54 }
 0x154   :  { %v241_v55 = vpop.trf.xlu0 }
 0x155   :  { %2204 = vmatprep.mubr.msk.f32.mxu1 %vm251_vm2, %v241_v55 }
 0x158   :  { %v242_v56 = vpop.trf.xlu0 }
 0x159   :  { %2205 = vmatmul.mubr.msk.f32.gmra.mxu1 %vm251_vm2, %v242_v56 }
 0x15c   :  { %v243_v57 = vpop.trf.xlu0 }
 0x15d   :  { %2207 = vmatprep.mubr.msk.f32.mxu1 %vm251_vm2, %v243_v57 }
 0x160   :  { %v244_v58 = vpop.trf.xlu0 }
 0x161   :  { %2208 = vmatmul.mubr.msk.f32.gmra.mxu1 %vm251_vm2, %v244_v58 }
 0x164   :  { %v245_v59 = vpop.trf.xlu0 }
 0x165   :  { %2210 = vmatprep.mubr.msk.f32.mxu1 %vm251_vm2, %v245_v59 }
 0x168   :  { %v246_v60 = vpop.trf.xlu0 }
 0x169   :  { %2211 = vmatmul.mubr.msk.f32.gmra.mxu1 %vm251_vm2, %v246_v60 }
 0x16c   :  { %v247_v61 = vpop.trf.xlu0 }
 0x16d   :  { %2213 = vmatprep.mubr.msk.f32.mxu1 %vm251_vm2, %v247_v61 }
 0x170   :  { %v248_v62 = vpop.trf.xlu0 }
 0x171   :  { %2214 = vmatmul.mubr.msk.f32.gmra.mxu1 %vm251_vm2, %v248_v62 }
 0x174   :  { %v249_v63 = vpop.trf.xlu0 }
 0x175   :  { %2216 = vmatprep.mubr.msk.f32.mxu1 %vm251_vm2, %v249_v63 }
 0x178   :  { %v250_v2 = vpop.trf.xlu0 }
 0x179   :  { %2217 = vmatmul.mubr.msk.f32.gmra.mxu1 %vm251_vm2, %v250_v2 }
 0x17a   :  { %2251 = vmatprep.mubr.msk.f32.mxu1 %vm2662_vm3, %v3931_v10 }
 0x201   :  { %v2197_v3 = vpop.f32.mrf.mxu1 }
 0x202   :  { %v446_v54 = vsub.f32 0.0, %v2197_v3 }
 0x203   :  { %v366_v11 = vpop.f32.mrf.mxu1 }
 0x204   :  { %v445_v20 = vsub.f32 0.0, %v366_v11  ;;  %v463_v57 = vmul.f32 1.442695, %v446_v54 }
 0x206   :  { %v461_v42 = vmul.f32 1.442695, %v445_v20 }
 0x209   :  { %v2200_v14 = vpop.f32.mrf.mxu1 }
 0x20a   :  { %v448_v2 = vsub.f32 0.0, %v2200_v14 }
 0x20b   :  { %v376_v15 = vpop.f32.mrf.mxu1 }
 0x20c   :  { %v447_v60 = vsub.f32 0.0, %v376_v15  ;;  %v467_v11 = vmul.f32 1.442695, %v448_v2 }
 0x20e   :  { %v465_v3 = vmul.f32 1.442695, %v447_v60 }
 0x211   :  { %v2828_v17 = vpop.f32.mrf.mxu1 }
 0x212   :  { %v450_v14 = vsub.f32 0.0, %v2828_v17 }
 0x213   :  { %v2830_v18 = vpop.f32.mrf.mxu1 }
 0x214   :  { %v449_v15 = vsub.f32 0.0, %v2830_v18 }
 0x219   :  { %v2832_v19 = vpop.f32.mrf.mxu1 }
 0x21b   :  { %v2834_v25 = vpop.f32.mrf.mxu1 }
 0x221   :  { %v2209_v27 = vpop.f32.mrf.mxu1 }
 0x222   :  { %v454_v34 = vsub.f32 0.0, %v2209_v27  ;;  %v452_v27 = vsub.f32 0.0, %v2832_v19  ;;  %v471_v19 = vmul.f32 1.442695, %v450_v14 }
 0x223   :  { %v406_v31 = vpop.f32.mrf.mxu1 }
 0x224   :  { %v479_v36 = vmul.f32 1.442695, %v454_v34  ;;  %v453_v58 = vsub.f32 0.0, %v406_v31 }
 0x226   :  { %v477_v61 = vmul.f32 1.442695, %v453_v58 }
 0x229   :  { %v2212_v39 = vpop.f32.mrf.mxu1 }
 0x22a   :  { %v456_v12 = vsub.f32 0.0, %v2212_v39  ;;  %v475_v39 = vmul.f32 1.442695, %v452_v27 }
 0x22b   :  { %v416_v13 = vpop.f32.mrf.mxu1 }
 0x22c   :  { %v483_v16 = vmul.f32 1.442695, %v456_v12  ;;  %v455_v26 = vsub.f32 0.0, %v416_v13  ;;  %v469_v13 = vmul.f32 1.442695, %v449_v15 }
 0x22e   :  { %2439 = vpow2.f32 %v483_v16  ;;  %v481_v35 = vmul.f32 1.442695, %v455_v26  ;;  %v451_v26 = vsub.f32 0.0, %v2834_v25 }
 0x230   :  { %2441 = vpow2.f32 %v481_v35  ;;  %v473_v18 = vmul.f32 1.442695, %v451_v26 }
 0x231   :  { %v2215_v38 = vpop.f32.mrf.mxu1  ;;  %2443 = vpow2.f32 %v479_v36 }
 0x232   :  { %v458_v37 = vsub.f32 0.0, %v2215_v38 }
 0x233   :  { %v426_v40 = vpop.f32.mrf.mxu1 }
 0x234   :  { %v487_v41 = vmul.f32 1.442695, %v458_v37  ;;  %v457_v45 = vsub.f32 0.0, %v426_v40 }
 0x236   :  { %2445 = vpow2.f32 %v487_v41  ;;  %v485_v47 = vmul.f32 1.442695, %v457_v45 }
 0x237   :  { %2447 = vpow2.f32 %v461_v42 }
 0x238   :  { %2449 = vpow2.f32 %v485_v47 }
 0x239   :  { %v2218_v46 = vpop.f32.mrf.mxu1 }
 0x23a   :  { %v460_v48 = vsub.f32 0.0, %v2218_v46 }
 0x23b   :  { %v2836_v49 = vpop.eup %2439  ;;  %v436_v21 = vpop.f32.mrf.mxu1 }
 0x23c   :  { %v491_v50 = vmul.f32 1.442695, %v460_v48  ;;  %515 = vadd.xlane.f32.xlu1 %v2836_v49  ;;  %v459_v51 = vsub.f32 0.0, %v436_v21 }
 0x23d   :  { %v2839_v52 = vpop.eup %2441 }
 0x23e   :  { %2451 = vpow2.f32 %v491_v50  ;;  %v2842_v53 = vpop.eup %2443  ;;  %v489_v55 = vmul.f32 1.442695, %v459_v51 }
 0x240   :  { %513 = vadd.xlane.f32.xlu1 %v2839_v52  ;;  %2453 = vpow2.f32 %v489_v55 }
 0x241   :  { %2455 = vpow2.f32 %v463_v57 }
 0x242   :  { %2457 = vpow2.f32 %v477_v61 }
 0x243   :  { %v2844_v56 = vpop.eup %2445  ;;  %2459 = vpow2.f32 %v465_v3 }
 0x244   :  { %511 = vadd.xlane.f32.xlu1 %v2842_v53  ;;  %519 = vadd.xlane.f32.xlu0 %v2844_v56  ;;  %v2848_v59 = vpop.eup %2447  ;;  %2461 = vpow2.f32 %v467_v11 }
 0x245   :  { %v2851_v62 = vpop.eup %2449  ;;  %2463 = vpow2.f32 %v475_v39 }
 0x246   :  { %2465 = vpow2.f32 %v469_v13 }
 0x247   :  { %2467 = vpow2.f32 %v471_v19 }
 0x248   :  { %493 = vadd.xlane.f32.xlu1 %v2848_v59  ;;  %2469 = vpow2.f32 %v473_v18 }
 0x24b   :  { %v2854_v63 = vpop.eup %2451 }
 0x24c   :  { %517 = vadd.xlane.f32.xlu1 %v2851_v62 }
 0x24d   :  { %v2858_v31 = vpop.eup %2453 }
 0x24e   :  { %v2862_v12 = vpop.eup %2455 }
 0x24f   :  { %v2866_v16 = vpop.eup %2457  ;;  %v557_v20 = vadd.f32 %v2862_v12, %v2848_v59 }
 0x250   :  { %523 = vadd.xlane.f32.xlu1 %v2854_v63  ;;  %v2870_v34 = vpop.eup %2459 }
 0x251   :  { %v2873_v35 = vpop.eup %2461  ;;  %v558_v37 = vadd.f32 %v2870_v34, %v557_v20 }
 0x252   :  { %v2876_v17 = vpop.eup %2463 }
 0x253   :  { %v2879_v36 = vpop.eup %2465  ;;  %v559_v40 = vadd.f32 %v2873_v35, %v558_v37 }
 0x254   :  { %521 = vadd.xlane.f32.xlu1 %v2858_v31  ;;  %v2882_v25 = vpop.eup %2467 }
 0x255   :  { %v2885_v38 = vpop.eup %2469  ;;  %v560_v41 = vadd.f32 %v2879_v36, %v559_v40 }
 0x257   :  { %v561_v42 = vadd.f32 %v2882_v25, %v560_v41 }
 0x258   :  { %495 = vadd.xlane.f32.xlu1 %v2862_v12 }
 0x259   :  { %v562_v45 = vadd.f32 %v2885_v38, %v561_v42 }
 0x25b   :  { %v563_v46 = vadd.f32 %v2876_v17, %v562_v45 }
 0x25c   :  { %509 = vadd.xlane.f32.xlu1 %v2866_v16 }
 0x25d   :  { %v564_v47 = vadd.f32 %v2866_v16, %v563_v46 }
 0x25f   :  { %v565_v48 = vadd.f32 %v2842_v53, %v564_v47 }
 0x260   :  { %497 = vadd.xlane.f32.xlu1 %v2870_v34 }
 0x261   :  { %v566_v21 = vadd.f32 %v2839_v52, %v565_v48 }
 0x263   :  { %v567_v50 = vadd.f32 %v2836_v49, %v566_v21 }
 0x264   :  { %499 = vadd.xlane.f32.xlu1 %v2873_v35 }
 0x265   :  { %v568_v51 = vadd.f32 %v2851_v62, %v567_v50 }
 0x267   :  { %v569_v54 = vadd.f32 %v2844_v56, %v568_v51 }
 0x268   :  { %507 = vadd.xlane.f32.xlu1 %v2876_v17 }
 0x269   :  { %v570_v55 = vadd.f32 %v2858_v31, %v569_v54 }
 0x26b   :  { %v571_v57 = vadd.f32 %v2854_v63, %v570_v55 }
 0x26c   :  { %501 = vadd.xlane.f32.xlu1 %v2879_v36 }
 0x26d   :  { %v572_v58 = vrot.slane %v571_v57, 4 }
 0x26f   :  { %v573_v61 = vadd.f32 %v572_v58, %v571_v57 }
 0x270   :  { %503 = vadd.xlane.f32.xlu1 %v2882_v25 }
 0x271   :  { %v574_v3 = vrot.slane %v573_v61, 2 }
 0x273   :  { %v575_v27 = vadd.f32 %v574_v3, %v573_v61 }
 0x274   :  { %505 = vadd.xlane.f32.xlu1 %v2885_v38 }
 0x275   :  { %v576_v39 = vrot.slane %v575_v27, 1 }
 0x277   :  { %v577_v13 = vadd.f32 %v576_v39, %v575_v27 }
 0x279   :  { %v578_v20 = vmax.f32 %v577_v13, 1.0 }
 0x2c5   :  { %v516_v60 = vpop.xlane.xlu1 %515 }
 0x2c6   :  { %v536_v45 = vmax.f32 %v516_v60, 1.0  ;;  %v54_v60 = vld [vmem:[%s3905_s1 + $0x78] sm:$0xff] }
 0x2c9   :  { %v514_v2 = vpop.xlane.xlu1 %513 }
 0x2ca   :  { %v535_v47 = vmax.f32 %v514_v2, 1.0 }
 0x2cd   :  { %v512_v11 = vpop.xlane.xlu1 %511  ;;  %v520_v19 = vpop.xlane.xlu0 %519 }
 0x2ce   :  { %v538_v26 = vmax.f32 %v520_v19, 1.0  ;;  %v534_v21 = vmax.f32 %v512_v11, 1.0 }
 0x2d1   :  { %v494_v15 = vpop.xlane.xlu1 %493 }
 0x2d2   :  { %v525_v54 = vmax.f32 %v494_v15, 1.0 }
 0x2d5   :  { %v518_v14 = vpop.xlane.xlu1 %517 }
 0x2d6   :  { %v537_v41 = vmax.f32 %v518_v14, 1.0 }
 0x2d9   :  { %v524_v18 = vpop.xlane.xlu1 %523 }
 0x2da   :  { %v540_v37 = vmax.f32 %v524_v18, 1.0 }
 0x2dc   :  { %2471 = vrsqrt.f32 %v540_v37 }
 0x2dd   :  { %2473 = vrsqrt.f32 %v538_v26  ;;  %v522_v40 = vpop.xlane.xlu1 %521  ;;  %v53_v26 = vld [vmem:[%s3905_s1 + $0x70] sm:$0xff] }
 0x2de   :  { %2475 = vrsqrt.f32 %v578_v20  ;;  %v539_v42 = vmax.f32 %v522_v40, 1.0 }
 0x2e0   :  { %2477 = vrsqrt.f32 %v539_v42  ;;  %v52_v42 = vld [vmem:[%s3905_s1 + $0x68] sm:$0xff] }
 0x2e1   :  { %v496_v46 = vpop.xlane.xlu1 %495  ;;  %2479 = vrsqrt.f32 %v537_v41 }
 0x2e2   :  { %2481 = vrsqrt.f32 %v536_v45  ;;  %v526_v50 = vmax.f32 %v496_v46, 1.0 }
 0x2e3   :  { %2483 = vrsqrt.f32 %v535_v47 }
 0x2e4   :  { %2485 = vrsqrt.f32 %v534_v21 }
 0x2e5   :  { %v510_v48 = vpop.xlane.xlu1 %509  ;;  %2487 = vrsqrt.f32 %v526_v50 }
 0x2e6   :  { %2489 = vrsqrt.f32 %v525_v54  ;;  %v533_v27 = vmax.f32 %v510_v48, 1.0 }
 0x2e9   :  { %v2472_v51 = vpop.eup %2471  ;;  %v498_v55 = vpop.xlane.xlu1 %497 }
 0x2ea   :  { %v2474_v57 = vpop.eup %2473  ;;  %v527_v58 = vmax.f32 %v498_v55, 1.0  ;;  %v595_v61 = vmul.f32 %v2472_v51, %v2854_v63 }
 0x2eb   :  { %v2905_v3 = vpop.eup %2475  ;;  %v593_v39 = vmul.f32 %v2474_v57, %v2844_v56 }
 0x2ec   :  { %v2911_v2 = vmul.f32 %v2905_v3, %v595_v61  ;;  %2491 = vrsqrt.f32 %v527_v58 }
 0x2ed   :  { %v2478_v11 = vpop.eup %2477  ;;  %v500_v15 = vpop.xlane.xlu1 %499 }
 0x2ee   :  { %v528_v14 = vmax.f32 %v500_v15, 1.0  ;;  %v2915_v63 = vadd.f32 %v2911_v2, %v54_v60  ;;  %v594_v13 = vmul.f32 %v2478_v11, %v2858_v31  ;;  %v2480_v19 = vpop.eup %2479  ;;  %v2929_v31 = vmul.f32 %v2905_v3, %v593_v39  ;;  %v50_v11 = vld [vmem:[%s3905_s1 + $0x58] sm:$0xff] }
 0x2ef   :  { %v2482_v20 = vpop.eup %2481  ;;  %v592_v41 = vmul.f32 %v2480_v19, %v2851_v62  ;;  %v51_v62 = vld [vmem:[%s3905_s1 + $0x60] sm:$0xff] }
 0x2f0   :  { %2493 = vrsqrt.f32 %v528_v14  ;;  %658 = vadd.xlane.f32.xlu1 %v2915_v63  ;;  %v2923_v18 = vmul.f32 %v2905_v3, %v594_v13  ;;  %v591_v46 = vmul.f32 %v2482_v20, %v2836_v49  ;;  %v2484_v47 = vpop.eup %2483  ;;  %v2938_v21 = vadd.f32 %v2929_v31, %v52_v42 }
 0x2f1   :  { %2495 = vrsqrt.f32 %v533_v27  ;;  %v508_v56 = vpop.xlane.xlu1 %507  ;;  %v2941_v50 = vmul.f32 %v2905_v3, %v592_v41  ;;  %v2486_v51 = vpop.eup %2485  ;;  %v590_v57 = vmul.f32 %v2484_v47, %v2839_v52 }
 0x2f2   :  { %v532_v37 = vmax.f32 %v508_v56, 1.0  ;;  %v2926_v40 = vadd.f32 %v2923_v18, %v53_v26  ;;  %v2488_v54 = vpop.eup %2487  ;;  %v2948_v49 = vmul.f32 %v2905_v3, %v591_v46  ;;  %v589_v56 = vmul.f32 %v2486_v51, %v2842_v53 }
 0x2f3   :  { %v2490_v58 = vpop.eup %2489  ;;  %v2952_v60 = vadd.f32 %v2941_v50, %v51_v62  ;;  %v581_v15 = vmul.f32 %v2488_v54, %v2862_v12  ;;  %v2963_v52 = vmul.f32 %v2905_v3, %v590_v57  ;;  %v49_v12 = vld [vmem:[%s3905_s1 + $0x50] sm:$0xff]  ;;  %v47_v57 = vld [vmem:[%s3905_s1 + $0x40] sm:$0xff] }
 0x2f4   :  { %656 = vadd.xlane.f32.xlu1 %v2926_v40  ;;  %2497 = vrsqrt.f32 %v532_v37  ;;  %v2960_v13 = vadd.f32 %v2948_v49, %v50_v11  ;;  %v580_v37 = vmul.f32 %v2490_v58, %v2848_v59  ;;  %v605_v53 = vmul.f32 %v2905_v3, %v589_v56  ;;  %v43_v11 = vld [vmem:[%s3905_s1 + $0x20] sm:$0xff]  ;;  %v41_v56 = vld [vmem:[%s3905_s1 + $0x10] sm:$0xff] }
 0x2f5   :  { %v502_v45 = vpop.xlane.xlu1 %501  ;;  %v597_v42 = vmul.f32 %v2905_v3, %v581_v15  ;;  %v2976_v46 = vadd.f32 %v2963_v52, %v49_v12 }
 0x2f6   :  { %v529_v48 = vmax.f32 %v502_v45, 1.0 }
 0x2f8   :  { %2499 = vrsqrt.f32 %v529_v48  ;;  %654 = vadd.xlane.f32.xlu1 %v2938_v21  ;;  %v48_v48 = vld [vmem:[%s3905_s1 + $0x48] sm:$0xff] }
 0x2f9   :  { %v504_v55 = vpop.xlane.xlu1 %503  ;;  %v2492_v27 = vpop.eup %2491  ;;  %v2987_v54 = vadd.f32 %v605_v53, %v48_v48  ;;  %v39_v48 = vld [vmem:[%s3905_s1] sm:$0xff] }
 0x2fa   :  { %v530_v61 = vmax.f32 %v504_v55, 1.0  ;;  %v582_v20 = vmul.f32 %v2492_v27, %v2870_v34  ;;  %v596_v34 = vmul.f32 %v2905_v3, %v580_v37 }
 0x2fc   :  { %2501 = vrsqrt.f32 %v530_v61  ;;  %652 = vadd.xlane.f32.xlu1 %v2952_v60  ;;  %v598_v59 = vmul.f32 %v2905_v3, %v582_v20  ;;  %v660_v62 = vadd.f32 %v597_v42, %v596_v34  ;;  %v46_v20 = vld [vmem:[%s3905_s1 + $0x38] sm:$0xff] }
 0x2fd   :  { %v2494_v39 = vpop.eup %2493  ;;  %v506_v14 = vpop.xlane.xlu1 %505 }
 0x2fe   :  { %v2496_v19 = vpop.eup %2495  ;;  %v531_v26 = vmax.f32 %v506_v14, 1.0  ;;  %v583_v41 = vmul.f32 %v2494_v39, %v2873_v35  ;;  %v661_v61 = vadd.f32 %v660_v62, %v598_v59  ;;  %v45_v62 = vld [vmem:[%s3905_s1 + $0x30] sm:$0xff] }
 0x2ff   :  { %v588_v45 = vmul.f32 %v2496_v19, %v2866_v16 }
 0x300   :  { %2503 = vrsqrt.f32 %v531_v26  ;;  %650 = vadd.xlane.f32.xlu1 %v2960_v13  ;;  %v599_v35 = vmul.f32 %v2905_v3, %v583_v41  ;;  %v3014_v41 = vadd.f32 %v598_v59, %v41_v56 }
 0x301   :  { %v2498_v47 = vpop.eup %2497  ;;  %v604_v51 = vmul.f32 %v2905_v3, %v588_v45 }
 0x302   :  { %v587_v58 = vmul.f32 %v2498_v47, %v2876_v17  ;;  %v662_v15 = vadd.f32 %v661_v61, %v599_v35 }
 0x303   :  { %v2999_v14 = vadd.f32 %v604_v51, %v47_v57  ;;  %v44_v57 = vld [vmem:[%s3905_s1 + $0x28] sm:$0xff] }
 0x304   :  { %648 = vadd.xlane.f32.xlu1 %v2976_v46  ;;  %v603_v19 = vmul.f32 %v2905_v3, %v587_v58 }
 0x305   :  { %v2500_v16 = vpop.eup %2499 }
 0x306   :  { %v584_v55 = vmul.f32 %v2500_v16, %v2879_v36  ;;  %v3016_v45 = vadd.f32 %v603_v19, %v46_v20  ;;  %v3028_v16 = vadd.f32 %v596_v34, %v39_v48 }
 0x308   :  { %646 = vadd.xlane.f32.xlu1 %v2987_v54  ;;  %v600_v27 = vmul.f32 %v2905_v3, %v584_v55 }
 0x309   :  { %v2502_v39 = vpop.eup %2501 }
 0x30a   :  { %v3001_v36 = vadd.f32 %v600_v27, %v43_v11  ;;  %v585_v26 = vmul.f32 %v2502_v39, %v2882_v25  ;;  %v663_v17 = vadd.f32 %v662_v15, %v600_v27  ;;  %v40_v39 = vld [vmem:[%s3905_s1 + $0x8] sm:$0xff] }
 0x30c   :  { %636 = vadd.xlane.f32.xlu0 %v3001_v36  ;;  %644 = vadd.xlane.f32.xlu1 %v2999_v14  ;;  %v601_v37 = vmul.f32 %v2905_v3, %v585_v26 }
 0x30d   :  { %v2504_v12 = vpop.eup %2503 }
 0x30e   :  { %v586_v25 = vmul.f32 %v2504_v12, %v2885_v38  ;;  %v664_v47 = vadd.f32 %v663_v17, %v601_v37  ;;  %v3037_v61 = vadd.f32 %v601_v37, %v44_v57  ;;  %v62_v12 = vld [vmem:[%s3907_s6 + $0x8] sm:$0xff] }
 0x310   :  { %632 = vadd.xlane.f32.xlu0 %v3014_v41  ;;  %642 = vadd.xlane.f32.xlu1 %v3016_v45  ;;  %v602_v59 = vmul.f32 %v2905_v3, %v586_v25  ;;  %v42_v3 = vld [vmem:[%s3905_s1 + $0x18] sm:$0xff] }
 0x311   :  { %v3043_v27 = vadd.f32 %v599_v35, %v42_v3  ;;  %v59_v35 = vld [vmem:[%s3906_s5] sm:$0xff]  ;;  %v3922_v3 = vmov 12  }
 0x312   :  { %v3030_v55 = vadd.f32 %v602_v59, %v45_v62  ;;  %v665_v38 = vadd.f32 %v664_v47, %v602_v59  ;;  %v56_v47 = vld [vmem:[%s3909_s2] sm:$0x1]  ;;  %v3924_v62 = vmov 9  }
 0x314   :  { %628 = vadd.xlane.f32.xlu0 %v3028_v16  ;;  %640 = vadd.xlane.f32.xlu1 %v3030_v55  ;;  %v666_v58 = vadd.f32 %v665_v38, %v603_v19  ;;  %v3923_v38 = vmov 10  }
 0x316   :  { %v667_v11 = vadd.f32 %v666_v58, %v604_v51  ;;  %v3051_v51 = vadd.f32 %v597_v42, %v40_v39 }
 0x318   :  { %638 = vadd.xlane.f32.xlu1 %v3037_v61  ;;  %v668_v34 = vadd.f32 %v667_v11, %v605_v53 }
 0x31a   :  { %v669_v15 = vadd.f32 %v668_v34, %v2963_v52 }
 0x31c   :  { %634 = vadd.xlane.f32.xlu1 %v3043_v27  ;;  %v670_v19 = vadd.f32 %v669_v15, %v2948_v49  ;;  %v60_v49 = vld [vmem:[%s3906_s5 + $0x8] sm:$0xff] }
 0x31e   :  { %v671_v26 = vadd.f32 %v670_v19, %v2941_v50  ;;  %v3088_v50 = vld [vmem:[%s3908_s7] sm:$0xff]  ;;  %v3921_v19 = vmov 13  }
 0x320   :  { %v672_v17 = vadd.f32 %v671_v26, %v2929_v31  ;;  %630 = vadd.xlane.f32.xlu1 %v3051_v51 }
 0x322   :  { %v673_v53 = vadd.f32 %v672_v17, %v2923_v18  ;;  %v3079_v18 = vld [vmem:[%s3908_s7 + $0x8] sm:$0xff] }
 0x324   :  { %v674_v52 = vadd.f32 %v673_v53, %v2911_v2  ;;  %v61_v2 = vld [vmem:[%s3907_s6] sm:$0xff] }
 0x326   :  { %v675_v31 = vrot.slane %v674_v52, 4 }
 0x328   :  { %v676_v42 = vadd.f32 %v675_v31, %v674_v52  ;;  %v3919_v52 = vmov 15  }
 0x32a   :  { %895 = vperm.xlu0 %2390, %v59_v35   ;;  %v677_v56 = vrot.slane %v676_v42, 2 }
 0x32c   :  { %v678_v20 = vadd.f32 %v677_v56, %v676_v42 }
 0x32e   :  { %2391 = vset.pattern.permute.xlu0 %v3915_v1  ;;  %v679_v37 = vrot.slane %v678_v20, 1 }
 0x32f   :  { %829 = vperm.xlu0 %2391, %v60_v49  }
 0x330   :  { %v680_v25 = vadd.f32 %v679_v37, %v678_v20 }
 0x331   :  { %824 = vperm.xlu1 %2385, %v59_v35  }
 0x332   :  { %v681_v48 = vadd.f32 %v680_v25, %v56_v47 }
 0x333   :  { %952 = vperm.xlu0 %2391, %v61_v2  }
 0x334   :  { %v714_v59 = vmax.f32 %v681_v48, 1.0 }
 0x335   :  { %2386 = vset.pattern.permute.xlu1 %v3933_v0 }
 0x336   :  { %839 = vperm.xlu1 %2386, %v59_v35   ;;  %2505 = vrsqrt.f32 %v714_v59 }
 0x337   :  { %1049 = vperm.xlu0 %2391, %v3079_v18  }
 0x33a   :  { %843 = vperm.xlu1 %2386, %v60_v49  }
 0x33b   :  { %2397 = vset.pattern.permute.xlu0 %v3933_v0 }
 0x33c   :  { %1063 = vperm.xlu0 %2397, %v3079_v18  }
 0x33e   :  { %2387 = vset.pattern.permute.xlu1 %v3930_v4 }
 0x33f   :  { %853 = vperm.xlu1 %2387, %v59_v35  }
 0x340   :  { %2399 = vset.pattern.permute.xlu0 %v3929_v5 }
 0x341   :  { %1087 = vperm.xlu0 %2399, %v3088_v50  }
 0x343   :  { %857 = vperm.xlu1 %2387, %v60_v49   ;;  %v2506_v53 = vpop.eup %2505 }
 0x344   :  { %v3128_v2 = vrot.slane %v2506_v53, %v2766_v24 }
 0x345   :  { %2402 = vset.pattern.permute.xlu0 %v3928_v6 }
 0x346   :  { %1105 = vperm.xlu0 %2402, %v3079_v18  }
 0x347   :  { %2388 = vset.pattern.permute.xlu1 %v3929_v5 }
 0x348   :  { %867 = vperm.xlu1 %2388, %v59_v35  }
 0x34a   :  { %2403 = vset.pattern.permute.xlu0 %v3926_v8 }
 0x34b   :  { %913 = vperm.xlu0 %2403, %v60_v49  }
 0x34c   :  { %871 = vperm.xlu1 %2388, %v60_v49  }
 0x34f   :  { %1129 = vperm.xlu0 %2403, %v3088_v50  }
 0x350   :  { %2389 = vset.pattern.permute.xlu1 %v3928_v6 }
 0x351   :  { %881 = vperm.xlu1 %2389, %v59_v35  }
 0x353   :  { %2407 = vset.pattern.permute.xlu0 %v3925_v9 }
 0x354   :  { %1147 = vperm.xlu0 %2407, %v3079_v18  }
 0x355   :  { %885 = vperm.xlu1 %2389, %v60_v49  }
 0x358   :  { %2409 = vset.pattern.permute.xlu0 %v3924_v62 }
 0x359   :  { %2392 = vset.pattern.permute.xlu1 %v3927_v7  ;;  %1171 = vperm.xlu0 %2409, %v3088_v50  }
 0x35a   :  { %899 = vperm.xlu1 %2392, %v60_v49  }
 0x35d   :  { %2412 = vset.pattern.permute.xlu0 %v3923_v38 }
 0x35e   :  { %2393 = vset.pattern.permute.xlu1 %v3926_v8  ;;  %1189 = vperm.xlu0 %2412, %v3079_v18  }
 0x35f   :  { %909 = vperm.xlu1 %2393, %v59_v35  }
 0x362   :  { %2414 = vset.pattern.permute.xlu0 %v3922_v3 }
 0x363   :  { %2394 = vset.pattern.permute.xlu1 %v3925_v9  ;;  %1213 = vperm.xlu0 %2414, %v3088_v50  }
 0x364   :  { %923 = vperm.xlu1 %2394, %v59_v35  }
 0x367   :  { %2417 = vset.pattern.permute.xlu0 %v3921_v19 }
 0x368   :  { %927 = vperm.xlu1 %2394, %v60_v49   ;;  %1231 = vperm.xlu0 %2417, %v3079_v18  }
 0x36c   :  { %2395 = vset.pattern.permute.xlu1 %v3915_v1  ;;  %2419 = vset.pattern.permute.xlu0 %v3919_v52 }
 0x36d   :  { %957 = vperm.xlu1 %2395, %v62_v12   ;;  %1255 = vperm.xlu0 %2419, %v3088_v50  }
 0x371   :  { %1044 = vperm.xlu1 %2395, %v3088_v50   ;;  %2421 = vset.pattern.permute.xlu0 %v3915_v1 }
 0x375   :  { %2396 = vset.pattern.permute.xlu1 %v3933_v0 }
 0x376   :  { %1059 = vperm.xlu1 %2396, %v3088_v50  }
 0x379   :  { %v659_v57 = vpop.xlane.xlu1 %658 }
 0x37a   :  { %v697_v58 = vmax.f32 %v659_v57, 1.0  ;;  %2398 = vset.pattern.permute.xlu1 %v3930_v4 }
 0x37b   :  { %1073 = vperm.xlu1 %2398, %v3088_v50  }
 0x37c   :  { %2507 = vrsqrt.f32 %v697_v58 }
 0x37d   :  { %v657_v11 = vpop.xlane.xlu1 %656 }
 0x37e   :  { %v696_v34 = vmax.f32 %v657_v11, 1.0 }
 0x37f   :  { %1077 = vperm.xlu1 %2398, %v3079_v18  }
 0x380   :  { %2509 = vrsqrt.f32 %v696_v34 }
 0x381   :  { %v655_v15 = vpop.xlane.xlu1 %654 }
 0x382   :  { %v695_v39 = vmax.f32 %v655_v15, 1.0 }
 0x383   :  { %2400 = vset.pattern.permute.xlu1 %v3929_v5 }
 0x384   :  { %2511 = vrsqrt.f32 %v695_v39  ;;  %1091 = vperm.xlu1 %2400, %v3079_v18  }
 0x385   :  { %v653_v26 = vpop.xlane.xlu1 %652 }
 0x386   :  { %v694_v17 = vmax.f32 %v653_v26, 1.0 }
 0x388   :  { %2513 = vrsqrt.f32 %v694_v17  ;;  %2401 = vset.pattern.permute.xlu1 %v3928_v6 }
 0x389   :  { %v2508_v35 = vpop.eup %2507  ;;  %v651_v49 = vpop.xlane.xlu1 %650  ;;  %1101 = vperm.xlu1 %2401, %v3088_v50  }
 0x38a   :  { %v693_v31 = vmax.f32 %v651_v49, 1.0  ;;  %v731_v42 = vmul.f32 %v2508_v35, %v2915_v63 }
 0x38c   :  { %2515 = vrsqrt.f32 %v693_v31  ;;  %v751_v56 = vmul.f32 %v3128_v2, %v731_v42 }
 0x38d   :  { %v2510_v20 = vpop.eup %2509  ;;  %v649_v37 = vpop.xlane.xlu1 %648  ;;  %2404 = vset.pattern.permute.xlu1 %v3927_v7 }
 0x38e   :  { %v692_v12 = vmax.f32 %v649_v37, 1.0  ;;  %2220 = vmatpush3.xpose.msra.mxu1 %v751_v56  ;;  %2037 = vst [vmem:[%s3910_s11 + $0x78] sm:$0xff] %v751_v56  ;;  %2255 = vmatpush3.xpose.msra.mxu0 %v751_v56  ;;  %v730_v25 = vmul.f32 %v2510_v20, %v2926_v40 }
 0x38f   :  { %2221 = vmatprep.subr.mxu1 %v3931_v10  ;;  %2256 = vmatprep.subr.mxu0 %v3931_v10 }
 0x390   :  { %2517 = vrsqrt.f32 %v692_v12  ;;  %v750_v63 = vmul.f32 %v3128_v2, %v730_v25  ;;  %1115 = vperm.xlu1 %2404, %v3088_v50  }
 0x391   :  { %v2512_v47 = vpop.eup %2511  ;;  %v647_v48 = vpop.xlane.xlu1 %646 }
 0x392   :  { %v691_v59 = vmax.f32 %v647_v48, 1.0  ;;  %2222 = vmatpush3.xpose.msra.mxu1 %v750_v63  ;;  %2036 = vst [vmem:[%s3910_s11 + $0x70] sm:$0xff] %v750_v63  ;;  %2257 = vmatpush3.xpose.msra.mxu0 %v750_v63  ;;  %v729_v40 = vmul.f32 %v2512_v47, %v2938_v21 }
 0x393   :  { %2223 = vmatprep.subr.mxu1 %v3931_v10  ;;  %2258 = vmatprep.subr.mxu0 %v3931_v10 }
 0x394   :  { %2519 = vrsqrt.f32 %v691_v59  ;;  %v749_v57 = vmul.f32 %v3128_v2, %v729_v40  ;;  %1119 = vperm.xlu1 %2404, %v3079_v18  }
 0x395   :  { %v2514_v58 = vpop.eup %2513  ;;  %v645_v11 = vpop.xlane.xlu1 %644 }
 0x396   :  { %v637_v34 = vpop.xlane.xlu0 %636  ;;  %v690_v15 = vmax.f32 %v645_v11, 1.0  ;;  %2224 = vmatpush3.xpose.msra.mxu1 %v749_v57  ;;  %2035 = vst [vmem:[%s3910_s11 + $0x68] sm:$0xff] %v749_v57  ;;  %2259 = vmatpush3.xpose.msra.mxu0 %v749_v57  ;;  %v728_v21 = vmul.f32 %v2514_v58, %v2952_v60  ;;  %v3920_v57 = vmov 8  }
 0x397   :  { %v686_v39 = vmax.f32 %v637_v34, 1.0  ;;  %2225 = vmatprep.subr.mxu1 %v3931_v10  ;;  %2260 = vmatprep.subr.mxu0 %v3931_v10 }
 0x398   :  { %2521 = vrsqrt.f32 %v690_v15  ;;  %v748_v26 = vmul.f32 %v3128_v2, %v728_v21  ;;  %2405 = vset.pattern.permute.xlu1 %v3926_v8 }
 0x399   :  { %v2516_v17 = vpop.eup %2515  ;;  %2523 = vrsqrt.f32 %v686_v39  ;;  %v643_v53 = vpop.xlane.xlu1 %642  ;;  %1133 = vperm.xlu1 %2405, %v3079_v18  }
 0x39a   :  { %v633_v35 = vpop.xlane.xlu0 %632  ;;  %v689_v49 = vmax.f32 %v643_v53, 1.0  ;;  %2226 = vmatpush3.xpose.msra.mxu1 %v748_v26  ;;  %2034 = vst [vmem:[%s3910_s11 + $0x60] sm:$0xff] %v748_v26  ;;  %2261 = vmatpush3.xpose.msra.mxu0 %v748_v26  ;;  %v727_v60 = vmul.f32 %v2516_v17, %v2960_v13 }
 0x39b   :  { %v684_v31 = vmax.f32 %v633_v35, 1.0  ;;  %2227 = vmatprep.subr.mxu1 %v3931_v10  ;;  %2262 = vmatprep.subr.mxu0 %v3931_v10 }
 0x39c   :  { %2525 = vrsqrt.f32 %v689_v49  ;;  %v747_v42 = vmul.f32 %v3128_v2, %v727_v60 }
 0x39d   :  { %v2518_v56 = vpop.eup %2517  ;;  %2527 = vrsqrt.f32 %v684_v31  ;;  %v641_v20 = vpop.xlane.xlu1 %640  ;;  %2406 = vset.pattern.permute.xlu1 %v3925_v9 }
 0x39e   :  { %v629_v37 = vpop.xlane.xlu0 %628  ;;  %v688_v12 = vmax.f32 %v641_v20, 1.0  ;;  %2228 = vmatpush3.xpose.msra.mxu1 %v747_v42  ;;  %2033 = vst [vmem:[%s3910_s11 + $0x58] sm:$0xff] %v747_v42  ;;  %2263 = vmatpush3.xpose.msra.mxu0 %v747_v42  ;;  %v726_v13 = vmul.f32 %v2518_v56, %v2976_v46 }
 0x39f   :  { %v682_v25 = vmax.f32 %v629_v37, 1.0  ;;  %2229 = vmatprep.subr.mxu1 %v3931_v10  ;;  %2264 = vmatprep.subr.mxu0 %v3931_v10 }
 0x3a0   :  { %2529 = vrsqrt.f32 %v688_v12  ;;  %v746_v63 = vmul.f32 %v3128_v2, %v726_v13  ;;  %1143 = vperm.xlu1 %2406, %v3088_v50  }
 0x3a1   :  { %v2520_v47 = vpop.eup %2519  ;;  %2531 = vrsqrt.f32 %v682_v25  ;;  %v639_v48 = vpop.xlane.xlu1 %638 }
 0x3a2   :  { %v687_v59 = vmax.f32 %v639_v48, 1.0  ;;  %2230 = vmatpush3.xpose.msra.mxu1 %v746_v63  ;;  %2032 = vst [vmem:[%s3910_s11 + $0x50] sm:$0xff] %v746_v63  ;;  %2265 = vmatpush3.xpose.msra.mxu0 %v746_v63  ;;  %v725_v46 = vmul.f32 %v2520_v47, %v2987_v54  ;;  %v3918_v47 = vmov 11  }
 0x3a3   :  { %2231 = vmatprep.subr.mxu1 %v3931_v10  ;;  %2266 = vmatprep.subr.mxu0 %v3931_v10 }
 0x3a4   :  { %2533 = vrsqrt.f32 %v687_v59  ;;  %v3182_v40 = vmul.f32 %v3128_v2, %v725_v46  ;;  %2408 = vset.pattern.permute.xlu1 %v3920_v57 }
 0x3a5   :  { %v2522_v58 = vpop.eup %2521  ;;  %v635_v11 = vpop.xlane.xlu1 %634  ;;  %1157 = vperm.xlu1 %2408, %v3088_v50  }
 0x3a6   :  { %3944 = vst [vmem:[#allocation4_spill] sm:$0xff] %v3182_v40  ;;  %v2524_v34 = vpop.eup %2523  ;;  %v685_v15 = vmax.f32 %v635_v11, 1.0  ;;  %2232 = vmatpush3.xpose.msra.mxu1 %v3182_v40  ;;  %2031 = vst [vmem:[%s3910_s11 + $0x48] sm:$0xff] %v3182_v40  ;;  %2267 = vmatpush3.xpose.msra.mxu0 %v3182_v40  ;;  %v724_v54 = vmul.f32 %v2522_v58, %v2999_v14 }
 0x3a7   :  { %2233 = vmatprep.subr.mxu1 %v3931_v10  ;;  %2268 = vmatprep.subr.mxu0 %v3931_v10  ;;  %v720_v39 = vmul.f32 %v2524_v34, %v3001_v36 }
 0x3a8   :  { %2535 = vrsqrt.f32 %v685_v15  ;;  %v3197_v21 = vmul.f32 %v3128_v2, %v724_v54 }
 0x3a9   :  { %v2526_v26 = vpop.eup %2525  ;;  %v631_v17 = vpop.xlane.xlu1 %630  ;;  %v740_v53 = vmul.f32 %v3128_v2, %v720_v39  ;;  %1161 = vperm.xlu1 %2408, %v3079_v18  }
 0x3aa   :  { %3945 = vst [vmem:[#allocation5_spill] sm:$0xff] %v3197_v21  ;;  %v2528_v35 = vpop.eup %2527  ;;  %v683_v49 = vmax.f32 %v631_v17, 1.0  ;;  %2234 = vmatpush3.xpose.msra.mxu1 %v3197_v21  ;;  %2030 = vst [vmem:[%s3910_s11 + $0x40] sm:$0xff] %v3197_v21  ;;  %2269 = vmatpush3.xpose.msra.mxu0 %v3197_v21  ;;  %v723_v14 = vmul.f32 %v2526_v26, %v3016_v45 }
 0x3ab   :  { %2235 = vmatprep.subr.mxu1 %v3931_v10  ;;  %2270 = vmatprep.subr.mxu0 %v3931_v10  ;;  %2026 = vst [vmem:[%s3910_s11 + $0x20] sm:$0xff] %v740_v53  ;;  %v718_v36 = vmul.f32 %v2528_v35, %v3014_v41 }
 0x3ac   :  { %2537 = vrsqrt.f32 %v683_v49  ;;  %v743_v31 = vmul.f32 %v3128_v2, %v723_v14 }
 0x3ad   :  { %v2530_v60 = vpop.eup %2529  ;;  %v3216_v42 = vmul.f32 %v3128_v2, %v718_v36  ;;  %2410 = vset.pattern.permute.xlu1 %v3924_v62  ;;  %v825_v59 = vpop.permute.xlu1 %824 }
 0x3ae   :  { %v2532_v45 = vpop.eup %2531  ;;  %2236 = vmatpush3.xpose.msra.mxu1 %v743_v31  ;;  %2029 = vst [vmem:[%s3910_s11 + $0x38] sm:$0xff] %v743_v31  ;;  %2271 = vmatpush3.xpose.msra.mxu0 %v743_v31  ;;  %v722_v56 = vmul.f32 %v2530_v60, %v3030_v55 }
 0x3af   :  { %3946 = vst [vmem:[#allocation6_spill] sm:$0xff] %v3216_v42  ;;  %2237 = vmatprep.subr.mxu1 %v3931_v10  ;;  %2272 = vmatprep.subr.mxu0 %v3931_v10  ;;  %2024 = vst [vmem:[%s3910_s11 + $0x10] sm:$0xff] %v3216_v42  ;;  %v716_v41 = vmul.f32 %v2532_v45, %v3028_v16 }
 0x3b0   :  { %v742_v20 = vmul.f32 %v3128_v2, %v722_v56  ;;  %1175 = vperm.xlu1 %2410, %v3079_v18   ;;  %v896_v56 = vpop.permute.xlu0 %895 }
 0x3b1   :  { %v2534_v37 = vpop.eup %2533  ;;  %v3233_v12 = vmul.f32 %v3128_v2, %v716_v41  ;;  %v840_v46 = vpop.permute.xlu1 %839 }
 0x3b2   :  { %2238 = vmatpush3.xpose.msra.mxu1 %v742_v20  ;;  %2028 = vst [vmem:[%s3910_s11 + $0x30] sm:$0xff] %v742_v20  ;;  %2273 = vmatpush3.xpose.msra.mxu0 %v742_v20  ;;  %v721_v55 = vmul.f32 %v2534_v37, %v3037_v61 }
 0x3b3   :  { %3947 = vst [vmem:[#allocation7_spill] sm:$0xff] %v3233_v12  ;;  %2239 = vmatprep.subr.mxu1 %v3931_v10  ;;  %2274 = vmatprep.subr.mxu0 %v3931_v10  ;;  %2022 = vst [vmem:[%s3910_s11] sm:$0xff] %v3233_v12 }
 0x3b4   :  { %v741_v16 = vmul.f32 %v3128_v2, %v721_v55  ;;  %2411 = vset.pattern.permute.xlu1 %v3923_v38  ;;  %v830_v20 = vpop.permute.xlu0 %829 }
 0x3b5   :  { %v2536_v25 = vpop.eup %2535  ;;  %1185 = vperm.xlu1 %2411, %v3088_v50   ;;  %v844_v58 = vpop.permute.xlu1 %843 }
 0x3b6   :  { %2240 = vmatpush3.xpose.msra.mxu1 %v741_v16  ;;  %2027 = vst [vmem:[%s3910_s11 + $0x28] sm:$0xff] %v741_v16  ;;  %2275 = vmatpush3.xpose.msra.mxu0 %v741_v16  ;;  %v719_v61 = vmul.f32 %v2536_v25, %v3043_v27 }
 0x3b7   :  { %2241 = vmatprep.subr.mxu1 %v3931_v10  ;;  %2276 = vmatprep.subr.mxu0 %v3931_v10 }
 0x3b8   :  { %v739_v13 = vmul.f32 %v3128_v2, %v719_v61  ;;  %v953_v55 = vpop.permute.xlu0 %952 }
 0x3b9   :  { %v2538_v63 = vpop.eup %2537  ;;  %2413 = vset.pattern.permute.xlu1 %v3918_v47 }
 0x3ba   :  { %2242 = vmatpush3.xpose.msra.mxu1 %v740_v53  ;;  %2277 = vmatpush3.xpose.msra.mxu0 %v740_v53  ;;  %2025 = vst [vmem:[%s3910_s11 + $0x18] sm:$0xff] %v739_v13  ;;  %v717_v48 = vmul.f32 %v2538_v63, %v3051_v51  ;;  %v2639_v51 = vld [vmem:[%s3903_s0] sm:$0xff]  ;;  %v854_v11 = vpop.permute.xlu1 %853 }
 0x3bb   :  { %2243 = vmatprep.subr.mxu1 %v3931_v10  ;;  %2278 = vmatprep.subr.mxu0 %v3931_v10 }
 0x3bc   :  { %v737_v27 = vmul.f32 %v3128_v2, %v717_v48  ;;  %1199 = vperm.xlu1 %2413, %v3088_v50   ;;  %v3917_v2 = vmov 14   ;;  %v3311_v25 = vpop.permute.xlu0 %1049 }
 0x3be   :  { %2244 = vmatpush3.xpose.msra.mxu1 %v739_v13  ;;  %2279 = vmatpush3.xpose.msra.mxu0 %v739_v13  ;;  %2023 = vst [vmem:[%s3910_s11 + $0x8] sm:$0xff] %v737_v27  ;;  %v858_v34 = vpop.permute.xlu1 %857 }
 0x3bf   :  { %2245 = vmatprep.subr.mxu1 %v3931_v10  ;;  %2280 = vmatprep.subr.mxu0 %v3931_v10 }
 0x3c0   :  { %1203 = vperm.xlu1 %2413, %v3079_v18   ;;  %v3315_v13 = vpop.permute.xlu0 %1063 }
 0x3c2   :  { %2246 = vmatpush3.xpose.msra.mxu1 %v3216_v42  ;;  %2281 = vmatpush3.xpose.msra.mxu0 %v3216_v42 }
 0x3c3   :  { %2247 = vmatprep.subr.mxu1 %v3931_v10  ;;  %2282 = vmatprep.subr.mxu0 %v3931_v10  ;;  %v868_v15 = vpop.permute.xlu1 %867 }
 0x3c4   :  { %2415 = vset.pattern.permute.xlu1 %v3922_v3  ;;  %v3319_v48 = vpop.permute.xlu0 %1087 }
 0x3c5   :  { %1217 = vperm.xlu1 %2415, %v3079_v18   ;;  %3955 = vst [vmem:[#allocation15_spill] sm:$0xff] %v3319_v48 }
 0x3c6   :  { %2248 = vmatpush3.xpose.msra.mxu1 %v737_v27  ;;  %2283 = vmatpush3.xpose.msra.mxu0 %v737_v27 }
 0x3c7   :  { %2249 = vmatprep.subr.mxu1 %v3931_v10  ;;  %2284 = vmatprep.subr.mxu0 %v3931_v10  ;;  %v872_v54 = vpop.permute.xlu1 %871 }
 0x3c9   :  { %2416 = vset.pattern.permute.xlu1 %v3921_v19 }
 0x3ca   :  { %2250 = vmatpush3.xpose.msra.mxu1 %v3233_v12  ;;  %2285 = vmatpush3.xpose.msra.mxu0 %v3233_v12 }
 0x3cb   :  { %1227 = vperm.xlu1 %2416, %v3088_v50   ;;  %2319 = vmatprep.subr.mxu0 %v3931_v10 }
 0x3cc   :  { %v882_v39 = vpop.permute.xlu1 %881 }
 0x3cd   :  { %2252 = vmatmul.mubr.f32.vlgmr.msra.gmra.mxu1 %v2639_v51  ;;  %v3323_v51 = vpop.permute.xlu0 %1105 }
 0x3cf   :  { %2418 = vset.pattern.permute.xlu1 %v3917_v2 }
 0x3d0   :  { %1241 = vperm.xlu1 %2418, %v3088_v50   ;;  %v886_v26 = vpop.permute.xlu1 %885 }
 0x3d1   :  { %v914_v2 = vpop.permute.xlu0 %913 }
 0x3d4   :  { %1245 = vperm.xlu1 %2418, %v3079_v18  }
 0x3d5   :  { %v900_v17 = vpop.permute.xlu1 %899 }
 0x3d8   :  { %2420 = vset.pattern.permute.xlu1 %v3919_v52  ;;  %v3329_v52 = vpop.permute.xlu0 %1129 }
 0x3d9   :  { %1259 = vperm.xlu1 %2420, %v3079_v18   ;;  %3956 = vst [vmem:[#allocation16_spill] sm:$0xff] %v3329_v52 }
 0x3da   :  { %v910_v53 = vpop.permute.xlu1 %909 }
 0x3dc   :  { %v3333_v19 = vpop.permute.xlu0 %1147 }
 0x3dd   :  { %3958 = vst [vmem:[#allocation18_spill] sm:$0xff] %v3333_v19 }
 0x3df   :  { %v924_v35 = vpop.permute.xlu1 %923 }
 0x3e0   :  { %v3345_v43 = vpop.permute.xlu0 %1171 }
 0x3e1   :  { %3959 = vst [vmem:[#allocation19_spill] sm:$0xff] %v3345_v43 }
 0x3e3   :  { %v928_v49 = vpop.permute.xlu1 %927 }
 0x3e8   :  { %v3291_v50 = vpop.permute.xlu1 %957 }
 0x3ec   :  { %v3293_v14 = vpop.permute.xlu1 %1044 }
 0x3ed   :  { %3948 = vst [vmem:[#allocation8_spill] sm:$0xff] %v3293_v14 }
 0x3f1   :  { %v3295_v36 = vpop.permute.xlu1 %1059 }
 0x3f2   :  { %3949 = vst [vmem:[#allocation9_spill] sm:$0xff] %v3295_v36 }
 0x3f6   :  { %v3297_v18 = vpop.permute.xlu1 %1073 }
 0x3f7   :  { %3950 = vst [vmem:[#allocation10_spill] sm:$0xff] %v3297_v18 }
 0x3fa   :  { %v3299_v31 = vpop.permute.xlu1 %1077 }
 0x3ff   :  { %v3301_v60 = vpop.permute.xlu1 %1091 }
 0x404   :  { %v3303_v45 = vpop.permute.xlu1 %1101 }
 0x405   :  { %3951 = vst [vmem:[#allocation11_spill] sm:$0xff] %v3303_v45 }
 0x40b   :  { %v3305_v41 = vpop.permute.xlu1 %1115 }
 0x40c   :  { %3952 = vst [vmem:[#allocation12_spill] sm:$0xff] %v3305_v41 }
 0x40f   :  { %v3307_v37 = vpop.permute.xlu1 %1119 }
 0x414   :  { %v3309_v16 = vpop.permute.xlu1 %1133 }
 0x41b   :  { %v3313_v61 = vpop.permute.xlu1 %1143 }
 0x41c   :  { %3953 = vst [vmem:[#allocation13_spill] sm:$0xff] %v3313_v61 }
 0x420   :  { %v3317_v63 = vpop.permute.xlu1 %1157 }
 0x421   :  { %3954 = vst [vmem:[#allocation14_spill] sm:$0xff] %v3317_v63 }
 0x424   :  { %v3321_v27 = vpop.permute.xlu1 %1161 }
 0x42b   :  { %v3325_v1 = vpop.permute.xlu1 %1175 }
 0x430   :  { %v3327_v47 = vpop.permute.xlu1 %1185 }
 0x437   :  { %v3331_v57 = vpop.permute.xlu1 %1199 }
 0x438   :  { %3957 = vst [vmem:[#allocation17_spill] sm:$0xff] %v3331_v57 }
 0x43b   :  { %v3335_v3 = vpop.permute.xlu1 %1203 }
 0x440   :  { %v1218_v44 = vpop.permute.xlu1 %1217 }
 0x48d   :  { %v818_v38 = vpop.f32.mrf.mxu1 }
 0x48e   :  { %v835_v62 = vrot.slane %v818_v38, %v2766_v24  ;;  %v849_v9 = vrot.slane %v818_v38, %v2763_v23  ;;  %v863_v8 = vrot.slane %v818_v38, %v2772_v28  ;;  %v877_v7 = vrot.slane %v818_v38, %v2760_v22 }
 0x48f   :  { %v891_v6 = vrot.slane %v818_v38, %v2775_v29  ;;  %v905_v5 = vrot.slane %v818_v38, %v2778_v30  ;;  %v919_v4 = vrot.slane %v818_v38, %v2782_v32  ;;  %v933_v10 = vrot.slane %v818_v38, %v2785_v33  ;;  %v2253_v0 = vpop.f32.mrf.mxu1 }
 0x490   :  { %v836_v12 = vmul.f32 %v835_v62, %v825_v59  ;;  %v837_v42 = vmul.f32 %v835_v62, %v830_v20  ;;  %v850_v21 = vmul.f32 %v849_v9, %v840_v46  ;;  %v851_v40 = vmul.f32 %v849_v9, %v844_v58 }
 0x491   :  { %v864_v57 = vmul.f32 %v863_v8, %v854_v11  ;;  %v865_v63 = vmul.f32 %v863_v8, %v858_v34  ;;  %v878_v61 = vmul.f32 %v877_v7, %v868_v15  ;;  %v879_v52 = vmul.f32 %v877_v7, %v872_v54  ;;  %v1228_v34 = vpop.permute.xlu1 %1227 }
 0x492   :  { %v892_v41 = vmul.f32 %v891_v6, %v882_v39  ;;  %v893_v45 = vmul.f32 %v891_v6, %v886_v26  ;;  %v906_v48 = vmul.f32 %v905_v5, %v896_v56  ;;  %v907_v18 = vmul.f32 %v905_v5, %v900_v17  ;;  %v1190_v6 = vpop.permute.xlu0 %1189 }
 0x493   :  { %v920_v36 = vmul.f32 %v919_v4, %v910_v53  ;;  %v921_v14 = vmul.f32 %v919_v4, %v914_v2  ;;  %v934_v19 = vmul.f32 %v933_v10, %v924_v35  ;;  %v935_v38 = vmul.f32 %v933_v10, %v928_v49 }
 0x494   :  { %v936_v0 = vadd.f32 %v850_v21, %v836_v12  ;;  %v937_v59 = vadd.f32 %v851_v40, %v837_v42  ;;  %v938_v62 = vadd.f32 %v878_v61, %v864_v57  ;;  %v939_v46 = vadd.f32 %v879_v52, %v865_v63 }
 0x495   :  { %v940_v9 = vadd.f32 %v906_v48, %v892_v41  ;;  %v941_v58 = vadd.f32 %v907_v18, %v893_v45  ;;  %v942_v20 = vadd.f32 %v934_v19, %v920_v36  ;;  %v943_v43 = vadd.f32 %v935_v38, %v921_v14  ;;  %v1242_v52 = vpop.permute.xlu1 %1241 }
 0x496   :  { %v944_v11 = vadd.f32 %v938_v62, %v936_v0  ;;  %v945_v8 = vadd.f32 %v939_v46, %v937_v59  ;;  %v1214_v57 = vpop.permute.xlu0 %1213 }
 0x497   :  { %v946_v7 = vadd.f32 %v942_v20, %v940_v9  ;;  %v947_v15 = vadd.f32 %v943_v43, %v941_v58 }
 0x499   :  { %v948_v54 = vadd.f32 %v946_v7, %v944_v11  ;;  %v949_v5 = vadd.f32 %v947_v15, %v945_v8  ;;  %v3961_v7 = vld [vmem:[#allocation8_spill] sm:$0xff]  ;;  %v3962_v15 = vld [vmem:[#allocation9_spill] sm:$0xff] }
 0x49a   :  { %v1232_v61 = vpop.permute.xlu0 %1231 }
 0x49b   :  { %v960_v39 = vadd.f32 %v953_v55, %v948_v54  ;;  %v961_v4 = vadd.f32 %v3291_v50, %v949_v5  ;;  %v1246_v55 = vpop.permute.xlu1 %1245  ;;  %v3963_v5 = vld [vmem:[#allocation10_spill] sm:$0xff] }
 0x49d   :  { %vm962_vm4 = vcmp.gt.f32.partialorder %v960_v39, 0.0  ;;  %v964_v10 = vmul.f32 0.2, %v960_v39  ;;  %vm963_vm5 = vcmp.gt.f32.partialorder %v961_v4, 0.0  ;;  %v965_v40 = vmul.f32 0.2, %v961_v4 }
 0x49f   :  { %v966_v21 = vsel %vm962_vm4, %v960_v39, %v964_v10  ;;  %v967_v19 = vsel %vm963_vm5, %v961_v4, %v965_v40  ;;  %v3964_v39 = vld [vmem:[#allocation15_spill] sm:$0xff] }
 0x4a0   :  { %v3349_v42 = vrot.slane %v967_v19, %v2766_v24  ;;  %v3352_v12 = vrot.slane %v967_v19, %v2763_v23  ;;  %v3355_v43 = vrot.slane %v967_v19, %v2772_v28  ;;  %v3358_v2 = vrot.slane %v967_v19, %v2760_v22  ;;  %v3965_v40 = vld [vmem:[#allocation11_spill] sm:$0xff] }
 0x4a1   :  { %v3361_v26 = vrot.slane %v967_v19, %v2782_v32  ;;  %v3364_v17 = vrot.slane %v967_v19, %v2775_v29  ;;  %v3367_v53 = vrot.slane %v967_v19, %v2778_v30  ;;  %v3370_v35 = vrot.slane %v966_v21, %v2766_v24 }
 0x4a2   :  { %v1169_v49 = vmul.f32 %v3349_v42, %v3321_v27  ;;  %v1183_v50 = vmul.f32 %v3352_v12, %v3325_v1  ;;  %v1196_v14 = vmul.f32 %v3355_v43, %v3327_v47  ;;  %v1211_v36 = vmul.f32 %v3358_v2, %v3335_v3 }
 0x4a3   :  { %v1197_v18 = vmul.f32 %v3355_v43, %v1190_v6  ;;  %v3382_v45 = vmul.f32 %v3361_v26, %v1242_v52  ;;  %v1238_v56 = vmul.f32 %v3367_v53, %v1228_v34  ;;  %v1224_v41 = vmul.f32 %v3364_v17, %v1214_v57  ;;  %v3966_v57 = vld [vmem:[#allocation12_spill] sm:$0xff] }
 0x4a4   :  { %v1277_v63 = vadd.f32 %v1183_v50, %v1169_v49  ;;  %v1253_v1 = vmul.f32 %v3361_v26, %v1246_v55  ;;  %v1225_v48 = vmul.f32 %v3364_v17, %v1218_v44  ;;  %v1239_v47 = vmul.f32 %v3367_v53, %v1232_v61  ;;  %v3967_v49 = vld [vmem:[#allocation16_spill] sm:$0xff]  ;;  %v1256_v55 = vpop.permute.xlu0 %1255 }
 0x4a5   :  { %v1279_v27 = vadd.f32 %v1211_v36, %v1197_v18  ;;  %v1280_v3 = vadd.f32 %v1238_v56, %v1224_v41  ;;  %v1057_v38 = vmul.f32 %v3370_v35, %v3311_v25  ;;  %v3392_v0 = vrot.slane %v966_v21, %v2763_v23  ;;  %v1260_v25 = vpop.permute.xlu1 %1259  ;;  %v3968_v36 = vld [vmem:[#allocation13_spill] sm:$0xff]  ;;  %v3969_v56 = vld [vmem:[#allocation14_spill] sm:$0xff] }
 0x4a6   :  { %v1281_v59 = vadd.f32 %v1239_v47, %v1225_v48  ;;  %v3395_v62 = vrot.slane %v966_v21, %v2772_v28  ;;  %v3398_v46 = vrot.slane %v966_v21, %v2760_v22  ;;  %v3401_v9 = vrot.slane %v966_v21, %v2775_v29  ;;  %v3971_v47 = vld [vmem:[#allocation17_spill] sm:$0xff] }
 0x4a7   :  { %v1289_v44 = vadd.f32 %v1279_v27, %v1277_v63  ;;  %v1071_v58 = vmul.f32 %v3392_v0, %v3315_v13  ;;  %v3406_v20 = vrot.slane %v966_v21, %v2778_v30  ;;  %v3409_v23 = vrot.slane %v966_v21, %v2782_v32  ;;  %v3970_v63 = vld [vmem:[#allocation19_spill] sm:$0xff] }
 0x4a8   :  { %v1085_v28 = vmul.f32 %v3395_v62, %v3299_v31  ;;  %v1099_v22 = vmul.f32 %v3398_v46, %v3301_v60  ;;  %v1113_v29 = vmul.f32 %v3401_v9, %v3323_v51  ;;  %v3418_v11 = vrot.slane %v966_v21, %v2785_v33  ;;  %v3960_v31 = vld [vmem:[#allocation18_spill] sm:$0xff] }
 0x4a9   :  { %v1127_v30 = vmul.f32 %v3406_v20, %v3307_v37  ;;  %v1141_v32 = vmul.f32 %v3409_v23, %v3309_v16  ;;  %v3425_v13 = vrot.slane %v967_v19, %v2785_v33  ;;  %v1269_v8 = vadd.f32 %v1071_v58, %v1057_v38 }
 0x4aa   :  { %v1155_v34 = vmul.f32 %v3418_v11, %v3960_v31  ;;  %v1271_v60 = vadd.f32 %v1099_v22, %v1085_v28  ;;  %v1056_v51 = vmul.f32 %v3370_v35, %v3961_v7  ;;  %v1070_v6 = vmul.f32 %v3392_v0, %v3962_v15 }
 0x4ab   :  { %v1267_v54 = vmul.f32 %v3425_v13, %v1260_v25  ;;  %v1273_v37 = vadd.f32 %v1127_v30, %v1113_v29  ;;  %v1084_v16 = vmul.f32 %v3395_v62, %v3963_v5  ;;  %v1098_v33 = vmul.f32 %v3398_v46, %v3964_v39 }
 0x4ac   :  { %v1275_v4 = vadd.f32 %v1155_v34, %v1141_v32  ;;  %v1285_v10 = vadd.f32 %v1271_v60, %v1269_v8  ;;  %v1112_v52 = vmul.f32 %v3401_v9, %v3965_v40  ;;  %v1126_v21 = vmul.f32 %v3406_v20, %v3966_v57 }
 0x4ad   :  { %v1283_v19 = vadd.f32 %v1267_v54, %v1253_v1  ;;  %v1140_v50 = vmul.f32 %v3409_v23, %v3967_v49  ;;  %v1154_v18 = vmul.f32 %v3418_v11, %v3968_v36  ;;  %v1168_v41 = vmul.f32 %v3349_v42, %v3969_v56  ;;  %v3973_v49 = vld [vmem:[#allocation3_spill] sm:$0xff] }
 0x4ae   :  { %v1287_v61 = vadd.f32 %v1275_v4, %v1273_v37  ;;  %v1182_v48 = vmul.f32 %v3352_v12, %v3970_v63  ;;  %v1210_v27 = vmul.f32 %v3358_v2, %v3971_v47  ;;  %v1268_v38 = vadd.f32 %v1070_v6, %v1056_v51 }
 0x4af   :  { %v1291_v58 = vadd.f32 %v1283_v19, %v1281_v59  ;;  %v1270_v1 = vadd.f32 %v1098_v33, %v1084_v16  ;;  %v1272_v25 = vadd.f32 %v1126_v21, %v1112_v52  ;;  %v1274_v28 = vadd.f32 %v1154_v18, %v1140_v50  ;;  %v3972_v21 = vld [vmem:[#allocation2_spill] sm:$0xff] }
 0x4b0   :  { %v1293_v22 = vadd.f32 %v1287_v61, %v1285_v10  ;;  %v1276_v29 = vadd.f32 %v1182_v48, %v1168_v41  ;;  %v1278_v30 = vadd.f32 %v1210_v27, %v1196_v14  ;;  %v1266_v32 = vmul.f32 %v3425_v13, %v1256_v55 }
 0x4b1   :  { %v1295_v8 = vadd.f32 %v1291_v58, %v1289_v44  ;;  %v1284_v31 = vadd.f32 %v1270_v1, %v1268_v38  ;;  %v1286_v34 = vadd.f32 %v1274_v28, %v1272_v25  ;;  %v3974_v56 = vmov 1  }
 0x4b2   :  { %v1288_v60 = vadd.f32 %v1278_v30, %v1276_v29  ;;  %v1282_v7 = vadd.f32 %v1266_v32, %v3382_v45  ;;  %v2640_v45 = vld [vmem:[%s3904_s3] sm:$0x1] }
 0x4b3   :  { %v1297_v15 = vadd.f32 %v1295_v8, %v1293_v22  ;;  %v1292_v54 = vadd.f32 %v1286_v34, %v1284_v31  ;;  %v2671_v8 = vmov 1.0   ;;  %v3975_v31 = vmov 0.0  }
 0x4b4   :  { %v1290_v37 = vadd.f32 %v1282_v7, %v1280_v3  ;;  %2287 = vmatmul.mubr.f32.vlgmr.msra.gmra.mxu0 %v2671_v8 }
 0x4b5   :  { %v1299_v51 = vmul.f32 %v1297_v15, %v1297_v15  ;;  %v1317_v33 = vmul.f32 -2.0, %v1297_v15  ;;  %2351 = vmatprep.mubr.msk.f32.mxu0 %vm2662_vm3, %v3975_v31 }
 0x4b6   :  { %v1294_v5 = vadd.f32 %v1290_v37, %v1288_v60 }
 0x4b8   :  { %v1296_v59 = vadd.f32 %v1294_v5, %v1292_v54 }
 0x4ba   :  { %v1298_v6 = vmul.f32 %v1296_v59, %v1296_v59  ;;  %v1316_v16 = vmul.f32 -2.0, %v1296_v59 }
 0x4bc   :  { %1318 = vxpose.xlu1.b32.start [1/3] (short) %v1316_v16, 128  ;;  %v1300_v39 = vadd.f32 %v1299_v51, %v1298_v6 }
 0x4be   :  { %v1301_v14 = vrot.slane %v1300_v39, 4 }
 0x4c0   :  { %1319 = vxpose.xlu1.b32.cont [2/3] (short) %v1317_v33, 128  ;;  %v1302_v4 = vadd.f32 %v1301_v14, %v1300_v39 }
 0x4c2   :  { %v1303_v44 = vrot.slane %v1302_v4, 2 }
 0x4c4   :  { %v1304_v10 = vadd.f32 %v1303_v44, %v1302_v4 }
 0x4c6   :  { %v1305_v40 = vrot.slane %v1304_v10, 1 }
 0x4c8   :  { %v1306_v52 = vadd.f32 %v1305_v40, %v1304_v10 }
 0x4ca   :  { %v1307_v3 = vadd.f32 %v2640_v45, %v1306_v52 }
 0x4cc   :  { %v1311_v57 = vrot.slane %v1307_v3, %v2766_v24 }
 0x4ce   :  { %v1314_v19 = vmul.f32 %v3972_v21, %v1311_v57  ;;  %v1312_v50 = vmul.f32 %v3973_v49, %v1311_v57 }
 0x4d0   :  { %v1315_v36 = vadd.f32 %v3973_v49, %v1314_v19  ;;  %v1313_v18 = vadd.f32 %v3972_v21, %v1312_v50 }
 0x4d2   :  { %2289 = vmatprep.subr.mxu1 %v1315_v36  ;;  %1320 = vxpose.xlu1.b32.end [3/3] (short) %v1313_v18, 128 }
 0x4d3   :  { %2290 = vmatpush3.msra.mxu1 %v1315_v36 }
 0x4d4   :  { %2291 = vmatprep.subr.mxu1 %v1297_v15 }
 0x4d5   :  { %2292 = vmatpush3.msra.mxu1 %v1297_v15 }
 0x4d6   :  { %2293 = vmatprep.subr.mxu1 %v1296_v59 }
 0x4d7   :  { %2294 = vmatpush3.msra.mxu1 %v1296_v59 }
 0x4f0   :  { %2422 = vset.pattern.permute.xlu1 %v3974_v56 }
 0x546   :  { %v1334_v41 = vpop.trf.xlu1 }
 0x547   :  { %2295 = vmatprep.mubr.msk.f32.mxu1 %vm251_vm2, %v1334_v41 }
 0x54a   :  { %v1335_v55 = vpop.trf.xlu1 }
 0x54b   :  { %2296 = vmatmul.mubr.msk.f32.vlgmr.msra.gmra.mxu1 %vm251_vm2, %v1335_v55 }
 0x54e   :  { %v1336_v61 = vpop.trf.xlu1 }
 0x54f   :  { %2298 = vmatprep.mubr.msk.f32.mxu1 %vm251_vm2, %v1336_v61 }
 0x552   :  { %v1337_v63 = vpop.trf.xlu1 }
 0x553   :  { %2299 = vmatmul.mubr.msk.f32.gmra.mxu1 %vm251_vm2, %v1337_v63 }
 0x556   :  { %v1338_v48 = vpop.trf.xlu1 }
 0x557   :  { %2301 = vmatprep.mubr.msk.f32.mxu1 %vm251_vm2, %v1338_v48 }
 0x55a   :  { %v1339_v47 = vpop.trf.xlu1 }
 0x55b   :  { %2302 = vmatmul.mubr.msk.f32.gmra.mxu1 %vm251_vm2, %v1339_v47 }
 0x55e   :  { %v1340_v27 = vpop.trf.xlu1 }
 0x55f   :  { %2304 = vmatprep.mubr.msk.f32.mxu1 %vm251_vm2, %v1340_v27 }
 0x562   :  { %v1341_v38 = vpop.trf.xlu1 }
 0x563   :  { %2305 = vmatmul.mubr.msk.f32.gmra.mxu1 %vm251_vm2, %v1341_v38 }
 0x566   :  { %v1342_v58 = vpop.trf.xlu1 }
 0x567   :  { %2307 = vmatprep.mubr.msk.f32.mxu1 %vm251_vm2, %v1342_v58 }
 0x56a   :  { %v1343_v1 = vpop.trf.xlu1 }
 0x56b   :  { %2308 = vmatmul.mubr.msk.f32.gmra.mxu1 %vm251_vm2, %v1343_v1 }
 0x56e   :  { %v1344_v25 = vpop.trf.xlu1 }
 0x56f   :  { %2310 = vmatprep.mubr.msk.f32.mxu1 %vm251_vm2, %v1344_v25 }
 0x572   :  { %v1345_v28 = vpop.trf.xlu1 }
 0x573   :  { %2311 = vmatmul.mubr.msk.f32.gmra.mxu1 %vm251_vm2, %v1345_v28 }
 0x576   :  { %v1346_v22 = vpop.trf.xlu1 }
 0x577   :  { %2313 = vmatprep.mubr.msk.f32.mxu1 %vm251_vm2, %v1346_v22 }
 0x57a   :  { %v1347_v29 = vpop.trf.xlu1 }
 0x57b   :  { %2314 = vmatmul.mubr.msk.f32.gmra.mxu1 %vm251_vm2, %v1347_v29 }
 0x57e   :  { %v1348_v30 = vpop.trf.xlu1 }
 0x57f   :  { %2316 = vmatprep.mubr.msk.f32.mxu1 %vm251_vm2, %v1348_v30 }
 0x582   :  { %v1349_v32 = vpop.trf.xlu1 }
 0x583   :  { %2317 = vmatmul.mubr.msk.f32.gmra.mxu1 %vm251_vm2, %v1349_v32 }
 0x60b   :  { %v2297_v34 = vpop.f32.mrf.mxu1 }
 0x60c   :  { %v1544_v47 = vsub.f32 0.0, %v2297_v34 }
 0x60d   :  { %v1464_v60 = vpop.f32.mrf.mxu1 }
 0x60e   :  { %v1543_v7 = vsub.f32 0.0, %v1464_v60  ;;  %v1561_v58 = vmul.f32 1.442695, %v1544_v47 }
 0x610   :  { %v1559_v15 = vmul.f32 1.442695, %v1543_v7 }
 0x612   :  { %2539 = vpow2.f32 %v1559_v15 }
 0x613   :  { %v2300_v54 = vpop.f32.mrf.mxu1 }
 0x614   :  { %v1546_v30 = vsub.f32 0.0, %v2300_v54 }
 0x615   :  { %v1474_v37 = vpop.f32.mrf.mxu1 }
 0x616   :  { %v1545_v28 = vsub.f32 0.0, %v1474_v37  ;;  %v1565_v34 = vmul.f32 1.442695, %v1546_v30 }
 0x618   :  { %v1563_v32 = vmul.f32 1.442695, %v1545_v28  ;;  %v3554_v28 = vpop.f32.mrf.mxu0 }
 0x61a   :  { %v2288_v30 = vpop.f32.mrf.mxu0 }
 0x61b   :  { %v3483_v51 = vpop.f32.mrf.mxu1 }
 0x61c   :  { %v1548_v54 = vsub.f32 0.0, %v3483_v51 }
 0x61d   :  { %v3486_v59 = vpop.f32.mrf.mxu1 }
 0x61e   :  { %v1547_v15 = vsub.f32 0.0, %v3486_v59 }
 0x61f   :  { %v3481_v5 = vpop.eup %2539 }
 0x620   :  { %1591 = vadd.xlane.f32.xlu0 %v3481_v5 }
 0x623   :  { %v2306_v6 = vpop.f32.mrf.mxu1 }
 0x624   :  { %v1550_v60 = vsub.f32 0.0, %v2306_v6  ;;  %v1569_v6 = vmul.f32 1.442695, %v1548_v54 }
 0x625   :  { %v3488_v16 = vpop.f32.mrf.mxu1 }
 0x626   :  { %v1573_v37 = vmul.f32 1.442695, %v1550_v60 }
 0x62b   :  { %v2309_v39 = vpop.f32.mrf.mxu1 }
 0x62c   :  { %v1552_v33 = vsub.f32 0.0, %v2309_v39 }
 0x62d   :  { %v1504_v4 = vpop.f32.mrf.mxu1 }
 0x62e   :  { %v1577_v14 = vmul.f32 1.442695, %v1552_v33  ;;  %v1551_v1 = vsub.f32 0.0, %v1504_v4  ;;  %v1567_v33 = vmul.f32 1.442695, %v1547_v15  ;;  %v1549_v4 = vsub.f32 0.0, %v3488_v16 }
 0x630   :  { %2541 = vpow2.f32 %v1577_v14  ;;  %v1575_v22 = vmul.f32 1.442695, %v1551_v1  ;;  %v1571_v59 = vmul.f32 1.442695, %v1549_v4 }
 0x633   :  { %v2312_v44 = vpop.f32.mrf.mxu1 }
 0x634   :  { %v1554_v10 = vsub.f32 0.0, %v2312_v44 }
 0x635   :  { %v1514_v40 = vpop.f32.mrf.mxu1 }
 0x636   :  { %v1581_v52 = vmul.f32 1.442695, %v1554_v10  ;;  %v1553_v45 = vsub.f32 0.0, %v1514_v40 }
 0x638   :  { %2543 = vpow2.f32 %v1581_v52  ;;  %v1579_v3 = vmul.f32 1.442695, %v1553_v45 }
 0x63a   :  { %2545 = vpow2.f32 %v1579_v3 }
 0x63b   :  { %v2315_v57 = vpop.f32.mrf.mxu1 }
 0x63c   :  { %v1556_v21 = vsub.f32 0.0, %v2315_v57 }
 0x63d   :  { %v3490_v19 = vpop.eup %2541  ;;  %v1524_v49 = vpop.f32.mrf.mxu1 }
 0x63e   :  { %v1585_v50 = vmul.f32 1.442695, %v1556_v21  ;;  %v1555_v36 = vsub.f32 0.0, %v1524_v49  ;;  %1609 = vadd.xlane.f32.xlu1 %v3490_v19 }
 0x640   :  { %2547 = vpow2.f32 %v1585_v50  ;;  %v1583_v18 = vmul.f32 1.442695, %v1555_v36 }
 0x642   :  { %2549 = vpow2.f32 %v1583_v18 }
 0x643   :  { %v2318_v56 = vpop.f32.mrf.mxu1 }
 0x644   :  { %v1558_v41 = vsub.f32 0.0, %v2318_v56 }
 0x645   :  { %v3493_v55 = vpop.eup %2543  ;;  %v1534_v61 = vpop.f32.mrf.mxu1 }
 0x646   :  { %v1589_v63 = vmul.f32 1.442695, %v1558_v41  ;;  %v1557_v48 = vsub.f32 0.0, %v1534_v61  ;;  %1613 = vadd.xlane.f32.xlu0 %v3493_v55 }
 0x647   :  { %v3496_v38 = vpop.eup %2545 }
 0x648   :  { %2551 = vpow2.f32 %v1589_v63  ;;  %v1587_v27 = vmul.f32 1.442695, %v1557_v48 }
 0x64a   :  { %1611 = vadd.xlane.f32.xlu0 %v3496_v38  ;;  %2553 = vpow2.f32 %v1587_v27 }
 0x64b   :  { %2555 = vpow2.f32 %v1561_v58 }
 0x64c   :  { %2557 = vpow2.f32 %v1575_v22 }
 0x64d   :  { %v3499_v25 = vpop.eup %2547  ;;  %2559 = vpow2.f32 %v1563_v32 }
 0x64e   :  { %1617 = vadd.xlane.f32.xlu0 %v3499_v25  ;;  %2561 = vpow2.f32 %v1565_v34 }
 0x64f   :  { %v3502_v29 = vpop.eup %2549  ;;  %2563 = vpow2.f32 %v1573_v37 }
 0x650   :  { %2565 = vpow2.f32 %v1567_v33 }
 0x651   :  { %2567 = vpow2.f32 %v1569_v6 }
 0x652   :  { %1615 = vadd.xlane.f32.xlu0 %v3502_v29  ;;  %2569 = vpow2.f32 %v1571_v59 }
 0x655   :  { %v3505_v8 = vpop.eup %2551 }
 0x656   :  { %1621 = vadd.xlane.f32.xlu0 %v3505_v8 }
 0x657   :  { %v3508_v7 = vpop.eup %2553 }
 0x658   :  { %v3512_v39 = vpop.eup %2555 }
 0x659   :  { %v3516_v14 = vpop.eup %2557  ;;  %v1655_v45 = vadd.f32 %v3512_v39, %v3481_v5 }
 0x65a   :  { %1619 = vadd.xlane.f32.xlu0 %v3508_v7  ;;  %v3520_v44 = vpop.eup %2559 }
 0x65b   :  { %v3523_v10 = vpop.eup %2561  ;;  %v1656_v3 = vadd.f32 %v3520_v44, %v1655_v45 }
 0x65c   :  { %v3526_v51 = vpop.eup %2563 }
 0x65d   :  { %v3529_v40 = vpop.eup %2565  ;;  %v1657_v57 = vadd.f32 %v3523_v10, %v1656_v3 }
 0x65e   :  { %1593 = vadd.xlane.f32.xlu0 %v3512_v39  ;;  %v3532_v16 = vpop.eup %2567 }
 0x65f   :  { %v3535_v52 = vpop.eup %2569  ;;  %v1658_v21 = vadd.f32 %v3529_v40, %v1657_v57 }
 0x661   :  { %v1659_v49 = vadd.f32 %v3532_v16, %v1658_v21 }
 0x662   :  { %1607 = vadd.xlane.f32.xlu0 %v3516_v14 }
 0x663   :  { %v1660_v50 = vadd.f32 %v3535_v52, %v1659_v49 }
 0x665   :  { %v1661_v36 = vadd.f32 %v3526_v51, %v1660_v50  ;;  %v3976_v50 = vld [vmem:[#allocation4_spill] sm:$0xff] }
 0x666   :  { %1595 = vadd.xlane.f32.xlu0 %v3520_v44 }
 0x667   :  { %v1662_v18 = vadd.f32 %v3516_v14, %v1661_v36 }
 0x669   :  { %v1663_v56 = vadd.f32 %v3490_v19, %v1662_v18 }
 0x66a   :  { %1597 = vadd.xlane.f32.xlu0 %v3523_v10 }
 0x66b   :  { %v1664_v41 = vadd.f32 %v3496_v38, %v1663_v56 }
 0x66d   :  { %v1665_v61 = vadd.f32 %v3493_v55, %v1664_v41 }
 0x66e   :  { %1605 = vadd.xlane.f32.xlu0 %v3526_v51 }
 0x66f   :  { %v1666_v63 = vadd.f32 %v3502_v29, %v1665_v61 }
 0x671   :  { %v1667_v48 = vadd.f32 %v3499_v25, %v1666_v63 }
 0x672   :  { %1599 = vadd.xlane.f32.xlu0 %v3529_v40 }
 0x673   :  { %v1668_v47 = vadd.f32 %v3508_v7, %v1667_v48 }
 0x675   :  { %v1669_v27 = vadd.f32 %v3505_v8, %v1668_v47 }
 0x676   :  { %1601 = vadd.xlane.f32.xlu0 %v3532_v16 }
 0x677   :  { %v1670_v58 = vrot.slane %v1669_v27, 4 }
 0x679   :  { %v1671_v1 = vadd.f32 %v1670_v58, %v1669_v27 }
 0x67a   :  { %1603 = vadd.xlane.f32.xlu0 %v3535_v52 }
 0x67b   :  { %v1672_v22 = vrot.slane %v1671_v1, 2 }
 0x67d   :  { %v1673_v32 = vadd.f32 %v1672_v22, %v1671_v1 }
 0x67f   :  { %v1674_v34 = vrot.slane %v1673_v32, 1 }
 0x681   :  { %v1675_v60 = vadd.f32 %v1674_v34, %v1673_v32 }
 0x683   :  { %v1676_v37 = vmax.f32 %v1675_v60, 1.0 }
 0x6a9   :  { %v1592_v33 = vpop.xlane.xlu0 %1591 }
 0x6aa   :  { %v1623_v63 = vmax.f32 %v1592_v33, 1.0 }
 0x6c7   :  { %v1610_v15 = vpop.xlane.xlu1 %1609 }
 0x6c8   :  { %v1632_v54 = vmax.f32 %v1610_v15, 1.0 }
 0x6ca   :  { %2571 = vrsqrt.f32 %v1632_v54 }
 0x6cb   :  { %2573 = vrsqrt.f32 %v1676_v37 }
 0x6cf   :  { %v1614_v6 = vpop.xlane.xlu0 %1613 }
 0x6d0   :  { %v1634_v41 = vmax.f32 %v1614_v6, 1.0 }
 0x6d2   :  { %2575 = vrsqrt.f32 %v1634_v41 }
 0x6d3   :  { %v1612_v4 = vpop.xlane.xlu0 %1611  ;;  %2577 = vrsqrt.f32 %v1623_v63 }
 0x6d4   :  { %v1633_v48 = vmax.f32 %v1612_v4, 1.0 }
 0x6d7   :  { %v2572_v59 = vpop.eup %2571  ;;  %v1618_v45 = vpop.xlane.xlu0 %1617 }
 0x6d8   :  { %v1687_v3 = vmul.f32 %v2572_v59, %v3490_v19  ;;  %v3557_v57 = vpop.eup %2573  ;;  %v1636_v58 = vmax.f32 %v1618_v45, 1.0 }
 0x6da   :  { %v3560_v21 = vmul.f32 %v3557_v57, %v1687_v3 }
 0x6db   :  { %v1616_v49 = vpop.xlane.xlu0 %1615 }
 0x6dc   :  { %v3564_v36 = vadd.f32 %v3560_v21, %v3976_v50  ;;  %v1635_v30 = vmax.f32 %v1616_v49, 1.0 }
 0x6de   :  { %1744 = vadd.xlane.f32.xlu0 %v3564_v36 }
 0x6df   :  { %v1622_v18 = vpop.xlane.xlu0 %1621  ;;  %v2576_v37 = vpop.eup %2575 }
 0x6e0   :  { %v1638_v60 = vmax.f32 %v1622_v18, 1.0  ;;  %v2578_v54 = vpop.eup %2577  ;;  %v1689_v59 = vmul.f32 %v2576_v37, %v3493_v55 }
 0x6e1   :  { %v1678_v63 = vmul.f32 %v2578_v54, %v3481_v5  ;;  %v2641_v5 = vld [vmem:[%s3910_s11 + $0x58] sm:$0xff] }
 0x6e3   :  { %v1620_v56 = vpop.xlane.xlu0 %1619 }
 0x6e4   :  { %v1637_v6 = vmax.f32 %v1620_v56, 1.0 }
 0x6e7   :  { %v1594_v61 = vpop.xlane.xlu0 %1593 }
 0x6e8   :  { %v1624_v22 = vmax.f32 %v1594_v61, 1.0  ;;  %v3573_v61 = vmul.f32 %v3557_v57, %v1689_v59  ;;  %v3979_v59 = vld [vmem:[#allocation7_spill] sm:$0xff] }
 0x6eb   :  { %v1608_v19 = vpop.xlane.xlu0 %1607 }
 0x6ec   :  { %v1631_v47 = vmax.f32 %v1608_v19, 1.0  ;;  %v3977_v19 = vld [vmem:[#allocation5_spill] sm:$0xff] }
 0x6ee   :  { %2579 = vrsqrt.f32 %v1631_v47 }
 0x6ef   :  { %2581 = vrsqrt.f32 %v1633_v48  ;;  %v1596_v27 = vpop.xlane.xlu0 %1595 }
 0x6f0   :  { %v1625_v1 = vmax.f32 %v1596_v27, 1.0 }
 0x6f2   :  { %2583 = vrsqrt.f32 %v1625_v1 }
 0x6f3   :  { %v1598_v32 = vpop.xlane.xlu0 %1597  ;;  %2585 = vrsqrt.f32 %v1636_v58 }
 0x6f4   :  { %2587 = vrsqrt.f32 %v1624_v22  ;;  %v1626_v34 = vmax.f32 %v1598_v32, 1.0 }
 0x6f5   :  { %2589 = vrsqrt.f32 %v1635_v30  ;;  %v1694_v30 = vmul.f32 %v3557_v57, %v1678_v63 }
 0x6f6   :  { %2591 = vrsqrt.f32 %v1626_v34 }
 0x6f7   :  { %v1606_v15 = vpop.xlane.xlu0 %1605  ;;  %2593 = vrsqrt.f32 %v1638_v60  ;;  %v3978_v60 = vld [vmem:[#allocation6_spill] sm:$0xff] }
 0x6f8   :  { %v1630_v48 = vmax.f32 %v1606_v15, 1.0 }
 0x6fb   :  { %v2580_v33 = vpop.eup %2579  ;;  %v1600_v4 = vpop.xlane.xlu0 %1599 }
 0x6fc   :  { %v2582_v45 = vpop.eup %2581  ;;  %v1627_v3 = vmax.f32 %v1600_v4, 1.0  ;;  %v1686_v49 = vmul.f32 %v2580_v33, %v3516_v14 }
 0x6fd   :  { %v1688_v56 = vmul.f32 %v2582_v45, %v3496_v38  ;;  %v3588_v38 = vadd.f32 %v2641_v5, %v3573_v61  ;;  %v3603_v45 = vadd.f32 %v1694_v30, %v3979_v59 }
 0x6fe   :  { %2595 = vrsqrt.f32 %v1627_v3  ;;  %v3570_v50 = vmul.f32 %v3557_v57, %v1686_v49  ;;  %v2642_v3 = vld [vmem:[%s3910_s11 + $0x50] sm:$0xff] }
 0x6ff   :  { %v2584_v41 = vpop.eup %2583  ;;  %2597 = vrsqrt.f32 %v1637_v6  ;;  %v1602_v18 = vpop.xlane.xlu0 %1601  ;;  %v3592_v32 = vmul.f32 %v3557_v57, %v1688_v56 }
 0x700   :  { %v1628_v55 = vmax.f32 %v1602_v18, 1.0  ;;  %v3579_v47 = vadd.f32 %v3570_v50, %v3977_v19  ;;  %v1680_v14 = vmul.f32 %v2584_v41, %v3520_v44  ;;  %v2586_v27 = vpop.eup %2585 }
 0x701   :  { %v2588_v1 = vpop.eup %2587  ;;  %v1691_v37 = vmul.f32 %v2586_v27, %v3499_v25  ;;  %v3609_v25 = vadd.f32 %v2642_v3, %v3592_v32 }
 0x702   :  { %2599 = vrsqrt.f32 %v1628_v55  ;;  %1742 = vadd.xlane.f32.xlu0 %v3579_v47  ;;  %v1696_v58 = vmul.f32 %v3557_v57, %v1680_v14  ;;  %v2590_v44 = vpop.eup %2589  ;;  %v1679_v54 = vmul.f32 %v2588_v1, %v3512_v39 }
 0x703   :  { %v1604_v22 = vpop.xlane.xlu0 %1603  ;;  %2601 = vrsqrt.f32 %v1630_v48  ;;  %v2592_v33 = vpop.eup %2591  ;;  %v1690_v6 = vmul.f32 %v2590_v44, %v3502_v29  ;;  %v3612_v49 = vmul.f32 %v3557_v57, %v1691_v37  ;;  %v2643_v48 = vld [vmem:[%s3910_s11 + $0x68] sm:$0xff] }
 0x704   :  { %v1629_v34 = vmax.f32 %v1604_v22, 1.0  ;;  %v3595_v15 = vadd.f32 %v1696_v58, %v3978_v60  ;;  %v2594_v4 = vpop.eup %2593  ;;  %v1681_v29 = vmul.f32 %v2592_v33, %v3523_v10  ;;  %v3618_v39 = vmul.f32 %v3557_v57, %v1679_v54  ;;  %v2645_v33 = vld [vmem:[%s3910_s11 + $0x78] sm:$0xff] }
 0x705   :  { %v1706_v18 = vmul.f32 %v3557_v57, %v1690_v6  ;;  %v1693_v63 = vmul.f32 %v2594_v4, %v3505_v8  ;;  %v3626_v55 = vadd.f32 %v2643_v48, %v3612_v49  ;;  %v2644_v8 = vld [vmem:[%s3910_s11 + $0x60] sm:$0xff]  ;;  %v2647_v48 = vld [vmem:[%s3910_s11 + $0x38] sm:$0xff] }
 0x706   :  { %2603 = vrsqrt.f32 %v1629_v34  ;;  %1730 = vadd.xlane.f32.xlu1 %v3595_v15  ;;  %1748 = vadd.xlane.f32.xlu0 %v3588_v38  ;;  %v1697_v10 = vmul.f32 %v3557_v57, %v1681_v29  ;;  %v1758_v14 = vadd.f32 %v3618_v39, %v1694_v30  ;;  %v2646_v29 = vld [vmem:[%s3910_s11 + $0x70] sm:$0xff] }
 0x707   :  { %v3635_v1 = vadd.f32 %v2644_v8, %v1706_v18  ;;  %v1709_v22 = vmul.f32 %v3557_v57, %v1693_v63  ;;  %v3661_v63 = vld [vmem:[%s3911_s8] sm:$0xff]  ;;  %v3980_v8 = vmov 2  }
 0x708   :  { %v1759_v34 = vadd.f32 %v1758_v14, %v1696_v58 }
 0x709   :  { %v3646_v6 = vadd.f32 %v2645_v33, %v1709_v22 }
 0x70a   :  { %1726 = vadd.xlane.f32.xlu1 %v3603_v45  ;;  %1746 = vadd.xlane.f32.xlu0 %v3609_v25  ;;  %v1760_v37 = vadd.f32 %v1759_v34, %v1697_v10  ;;  %v3981_v34 = vmov 3  }
 0x70b   :  { %v2596_v41 = vpop.eup %2595 }
 0x70c   :  { %v2598_v56 = vpop.eup %2597  ;;  %v1682_v19 = vmul.f32 %v2596_v41, %v3529_v40 }
 0x70d   :  { %v1692_v5 = vmul.f32 %v2598_v56, %v3508_v7 }
 0x70e   :  { %1752 = vadd.xlane.f32.xlu0 %v3626_v55  ;;  %v1698_v40 = vmul.f32 %v3557_v57, %v1682_v19 }
 0x70f   :  { %v2600_v27 = vpop.eup %2599  ;;  %v1708_v7 = vmul.f32 %v3557_v57, %v1692_v5 }
 0x710   :  { %v1683_v44 = vmul.f32 %v2600_v27, %v3532_v16  ;;  %v2602_v60 = vpop.eup %2601  ;;  %v1761_v58 = vadd.f32 %v1760_v37, %v1698_v40 }
 0x711   :  { %v1685_v16 = vmul.f32 %v2602_v60, %v3526_v51  ;;  %v3656_v41 = vadd.f32 %v2646_v29, %v1708_v7 }
 0x712   :  { %1750 = vadd.xlane.f32.xlu0 %v3635_v1  ;;  %v1699_v30 = vmul.f32 %v3557_v57, %v1683_v44 }
 0x713   :  { %v2604_v54 = vpop.eup %2603  ;;  %v1701_v51 = vmul.f32 %v3557_v57, %v1685_v16  ;;  %v3982_v16 = vmov 4  }
 0x714   :  { %v1684_v4 = vmul.f32 %v2604_v54, %v3535_v52  ;;  %v1762_v3 = vadd.f32 %v1761_v58, %v1699_v30  ;;  %v3986_v58 = vmov 9  }
 0x715   :  { %v3669_v19 = vadd.f32 %v2647_v48, %v1701_v51  ;;  %v3991_v48 = vmov 15  }
 0x716   :  { %1756 = vadd.xlane.f32.xlu0 %v3646_v6  ;;  %v1700_v59 = vmul.f32 %v3557_v57, %v1684_v4  ;;  %v2648_v57 = vld [vmem:[%s3910_s11 + $0x30] sm:$0xff] }
 0x718   :  { %v1763_v52 = vadd.f32 %v1762_v3, %v1700_v59  ;;  %v3679_v5 = vadd.f32 %v2648_v57, %v1700_v59  ;;  %v3987_v59 = vmov 10   ;;  %v3994_v57 = vmov 0  }
 0x71a   :  { %1754 = vadd.xlane.f32.xlu0 %v3656_v41  ;;  %v1764_v56 = vadd.f32 %v1763_v52, %v1701_v51  ;;  %v3989_v51 = vmov 13   ;;  %v3990_v52 = vmov 8  }
 0x71b   :  { %1857 = vperm.xlu1 %2422, %v3661_v63  }
 0x71c   :  { %v1765_v14 = vadd.f32 %v1764_v56, %v3570_v50 }
 0x71e   :  { %1740 = vadd.xlane.f32.xlu0 %v3669_v19  ;;  %v1766_v27 = vadd.f32 %v1765_v14, %v3560_v21  ;;  %v2649_v21 = vld [vmem:[%s3910_s11 + $0x28] sm:$0xff]  ;;  %v3992_v14 = vmov 11  }
 0x71f   :  { %2423 = vset.pattern.permute.xlu1 %v3980_v8  ;;  %v3688_v60 = vadd.f32 %v2649_v21, %v1699_v30  ;;  %v2651_v30 = vld [vmem:[%s3910_s11 + $0x18] sm:$0xff]  ;;  %v3993_v8 = vmov 14  }
 0x720   :  { %1862 = vperm.xlu1 %2423, %v3661_v63   ;;  %v1767_v44 = vadd.f32 %v1766_v27, %v3592_v32  ;;  %v2650_v32 = vld [vmem:[%s3910_s11 + $0x20] sm:$0xff]  ;;  %v3704_v4 = vadd.f32 %v2651_v30, %v1697_v10  ;;  %v3985_v10 = vmov 7  }
 0x722   :  { %1738 = vadd.xlane.f32.xlu0 %v3679_v5  ;;  %v1768_v50 = vadd.f32 %v1767_v44, %v3573_v61  ;;  %v3696_v61 = vadd.f32 %v2650_v32, %v1698_v40  ;;  %v2652_v40 = vld [vmem:[%s3910_s11 + $0x8] sm:$0xff]  ;;  %v1041_v32 = vld [vmem:[%s3912_s9] sm:$0xff] }
 0x724   :  { %2424 = vset.pattern.permute.xlu1 %v3981_v34  ;;  %v1769_v37 = vadd.f32 %v1768_v50, %v1706_v18 }
 0x725   :  { %1867 = vperm.xlu1 %2424, %v3661_v63  }
 0x726   :  { %1736 = vadd.xlane.f32.xlu0 %v3688_v60  ;;  %v1770_v54 = vadd.f32 %v1769_v37, %v3612_v49  ;;  %v3983_v49 = vmov 5  }
 0x728   :  { %v1771_v33 = vadd.f32 %v1770_v54, %v1708_v7  ;;  %v3713_v7 = vadd.f32 %v2652_v40, %v3618_v39  ;;  %v3988_v39 = vmov 12  }
 0x729   :  { %2425 = vset.pattern.permute.xlu1 %v3982_v16 }
 0x72a   :  { %1872 = vperm.xlu1 %2425, %v3661_v63   ;;  %1734 = vadd.xlane.f32.xlu0 %v3696_v61  ;;  %v1772_v18 = vadd.f32 %v1771_v33, %v1709_v22  ;;  %v3984_v22 = vmov 6  }
 0x72c   :  { %v1773_v3 = vrot.slane %v1772_v18, 4 }
 0x72e   :  { %2426 = vset.pattern.permute.xlu1 %v3983_v49  ;;  %1732 = vadd.xlane.f32.xlu0 %v3704_v4  ;;  %v1774_v29 = vadd.f32 %v1773_v3, %v1772_v18 }
 0x72f   :  { %1877 = vperm.xlu1 %2426, %v3661_v63  }
 0x730   :  { %v1775_v56 = vrot.slane %v1774_v29, 2 }
 0x732   :  { %1728 = vadd.xlane.f32.xlu0 %v3713_v7  ;;  %v1776_v27 = vadd.f32 %v1775_v56, %v1774_v29 }
 0x733   :  { %2427 = vset.pattern.permute.xlu1 %v3984_v22 }
 0x734   :  { %1882 = vperm.xlu1 %2427, %v3661_v63   ;;  %v1777_v44 = vrot.slane %v1776_v27, 1 }
 0x736   :  { %v1778_v50 = vadd.f32 %v1777_v44, %v1776_v27 }
 0x738   :  { %2428 = vset.pattern.permute.xlu1 %v3985_v10  ;;  %v1779_v34 = vadd.f32 %v1778_v50, %v3554_v28 }
 0x739   :  { %1887 = vperm.xlu1 %2428, %v3661_v63  }
 0x73a   :  { %v1812_v21 = vmax.f32 %v1779_v34, 1.0 }
 0x73c   :  { %2605 = vrsqrt.f32 %v1812_v21 }
 0x73d   :  { %2430 = vset.pattern.permute.xlu1 %v3986_v58 }
 0x73e   :  { %1897 = vperm.xlu1 %2430, %v3661_v63  }
 0x742   :  { %2431 = vset.pattern.permute.xlu1 %v3987_v59 }
 0x743   :  { %1902 = vperm.xlu1 %2431, %v3661_v63  }
 0x747   :  { %2433 = vset.pattern.permute.xlu1 %v3988_v39 }
 0x748   :  { %1912 = vperm.xlu1 %2433, %v3661_v63   ;;  %1852 = vperm.xlu0 %2421, %v3661_v63  }
 0x749   :  { %v2606_v33 = vpop.eup %2605 }
 0x74c   :  { %2434 = vset.pattern.permute.xlu1 %v3989_v51  ;;  %2429 = vset.pattern.permute.xlu0 %v3990_v52 }
 0x74d   :  { %1917 = vperm.xlu1 %2434, %v3661_v63   ;;  %1892 = vperm.xlu0 %2429, %v3661_v63  }
 0x751   :  { %2436 = vset.pattern.permute.xlu1 %v3991_v48  ;;  %2432 = vset.pattern.permute.xlu0 %v3992_v14 }
 0x752   :  { %1927 = vperm.xlu1 %2436, %v3661_v63   ;;  %1907 = vperm.xlu0 %2432, %v3661_v63  }
 0x756   :  { %2435 = vset.pattern.permute.xlu0 %v3993_v8  ;;  %2437 = vset.pattern.permute.xlu1 %v3994_v57 }
 0x757   :  { %1922 = vperm.xlu0 %2435, %v3661_v63   ;;  %1948 = vperm.xlu1 %2437, %v1041_v32   ;;  %v3744_v63 = vrot.slane %v2606_v33, %v2766_v24 }
 0x75b   :  { %2438 = vset.pattern.permute.xlu0 %v3994_v57 }
 0x767   :  { %v1745_v37 = vpop.xlane.xlu0 %1744 }
 0x768   :  { %v1789_v54 = vmax.f32 %v1745_v37, 1.0 }
 0x76a   :  { %2607 = vrsqrt.f32 %v1789_v54 }
 0x777   :  { %v2608_v16 = vpop.eup %2607 }
 0x778   :  { %v1823_v18 = vmul.f32 %v2608_v16, %v3564_v36 }
 0x77a   :  { %v3748_v30 = vmul.f32 %v3744_v63, %v1823_v18 }
 0x77c   :  { %2047 = vst [vmem:[%s3913_s12 + $0x48] sm:$0xff] %v3748_v30 }
 0x78b   :  { %v1743_v28 = vpop.xlane.xlu0 %1742 }
 0x78c   :  { %v1788_v49 = vmax.f32 %v1743_v28, 1.0 }
 0x78e   :  { %2609 = vrsqrt.f32 %v1788_v49 }
 0x78f   :  { %v1749_v40 = vpop.xlane.xlu0 %1748  ;;  %v1731_v22 = vpop.xlane.xlu1 %1730 }
 0x790   :  { %v1791_v10 = vmax.f32 %v1749_v40, 1.0  ;;  %v1782_v58 = vmax.f32 %v1731_v22, 1.0 }
 0x792   :  { %2611 = vrsqrt.f32 %v1791_v10 }
 0x793   :  { %2613 = vrsqrt.f32 %v1782_v58  ;;  %v1747_v24 = vpop.xlane.xlu0 %1746  ;;  %v1727_v59 = vpop.xlane.xlu1 %1726 }
 0x794   :  { %v1790_v36 = vmax.f32 %v1747_v24, 1.0  ;;  %v1780_v39 = vmax.f32 %v1727_v59, 1.0 }
 0x796   :  { %2615 = vrsqrt.f32 %v1790_v36 }
 0x797   :  { %2617 = vrsqrt.f32 %v1780_v39  ;;  %v1753_v3 = vpop.xlane.xlu0 %1752  ;;  %v3755_v14 = vpop.permute.xlu1 %1857 }
 0x798   :  { %v1793_v29 = vmax.f32 %v1753_v3, 1.0 }
 0x79a   :  { %2619 = vrsqrt.f32 %v1793_v29 }
 0x79b   :  { %v2610_v51 = vpop.eup %2609  ;;  %v1751_v52 = vpop.xlane.xlu0 %1750 }
 0x79c   :  { %v1792_v56 = vmax.f32 %v1751_v52, 1.0  ;;  %v1822_v48 = vmul.f32 %v2610_v51, %v3579_v47  ;;  %v3772_v16 = vpop.permute.xlu1 %1862 }
 0x79e   :  { %2621 = vrsqrt.f32 %v1792_v56  ;;  %v3758_v27 = vmul.f32 %v3744_v63, %v1822_v48 }
 0x79f   :  { %v2612_v8 = vpop.eup %2611  ;;  %v1757_v57 = vpop.xlane.xlu0 %1756 }
 0x7a0   :  { %v2614_v44 = vpop.eup %2613  ;;  %v1795_v50 = vmax.f32 %v1757_v57, 1.0  ;;  %v1825_v34 = vmul.f32 %v2612_v8, %v3588_v38  ;;  %2046 = vst [vmem:[%s3913_s12 + $0x40] sm:$0xff] %v3758_v27 }
 0x7a1   :  { %v1816_v21 = vmul.f32 %v2614_v44, %v3595_v15 }
 0x7a2   :  { %2623 = vrsqrt.f32 %v1795_v50  ;;  %v3767_v47 = vmul.f32 %v3744_v63, %v1825_v34 }
 0x7a3   :  { %v2616_v37 = vpop.eup %2615  ;;  %v1755_v54 = vpop.xlane.xlu0 %1754  ;;  %v3770_v32 = vmul.f32 %v3744_v63, %v1816_v21 }
 0x7a4   :  { %v2618_v33 = vpop.eup %2617  ;;  %v1794_v38 = vmax.f32 %v1755_v54, 1.0  ;;  %2049 = vst [vmem:[%s3913_s12 + $0x58] sm:$0xff] %v3767_v47  ;;  %v1824_v15 = vmul.f32 %v2616_v37, %v3609_v25 }
 0x7a5   :  { %2040 = vst [vmem:[%s3913_s12 + $0x10] sm:$0xff] %v3770_v32  ;;  %v1814_v18 = vmul.f32 %v2618_v33, %v3603_v45  ;;  %v3799_v45 = vpop.permute.xlu1 %1867 }
 0x7a6   :  { %2625 = vrsqrt.f32 %v1794_v38  ;;  %v3785_v28 = vmul.f32 %v3744_v63, %v1824_v15 }
 0x7a7   :  { %v2620_v49 = vpop.eup %2619  ;;  %v1741_v40 = vpop.xlane.xlu0 %1740  ;;  %v3788_v22 = vmul.f32 %v3744_v63, %v1814_v18 }
 0x7a8   :  { %v1787_v10 = vmax.f32 %v1741_v40, 1.0  ;;  %v1827_v58 = vmul.f32 %v2620_v49, %v3626_v55  ;;  %2048 = vst [vmem:[%s3913_s12 + $0x50] sm:$0xff] %v3785_v28 }
 0x7a9   :  { %2038 = vst [vmem:[%s3913_s12] sm:$0xff] %v3788_v22  ;;  %v3807_v51 = vpop.permute.xlu1 %1872 }
 0x7aa   :  { %2627 = vrsqrt.f32 %v1787_v10  ;;  %v1847_v25 = vmul.f32 %v3744_v63, %v1827_v58 }
 0x7ab   :  { %v2622_v24 = vpop.eup %2621  ;;  %v1739_v59 = vpop.xlane.xlu0 %1738 }
 0x7ac   :  { %v1786_v36 = vmax.f32 %v1739_v59, 1.0  ;;  %2051 = vst [vmem:[%s3913_s12 + $0x68] sm:$0xff] %v1847_v25  ;;  %v1826_v55 = vmul.f32 %v2622_v24, %v3635_v1 }
 0x7ae   :  { %2629 = vrsqrt.f32 %v1786_v36  ;;  %v1846_v39 = vmul.f32 %v3744_v63, %v1826_v55 }
 0x7af   :  { %v2624_v3 = vpop.eup %2623  ;;  %v1737_v29 = vpop.xlane.xlu0 %1736 }
 0x7b0   :  { %v1785_v52 = vmax.f32 %v1737_v29, 1.0  ;;  %v1829_v56 = vmul.f32 %v2624_v3, %v3646_v6  ;;  %2050 = vst [vmem:[%s3913_s12 + $0x60] sm:$0xff] %v1846_v39  ;;  %v3819_v6 = vpop.permute.xlu1 %1877 }
 0x7b2   :  { %2631 = vrsqrt.f32 %v1785_v52  ;;  %v1849_v48 = vmul.f32 %v3744_v63, %v1829_v56 }
 0x7b3   :  { %v2626_v8 = vpop.eup %2625  ;;  %v1735_v57 = vpop.xlane.xlu0 %1734 }
 0x7b4   :  { %v1784_v1 = vmax.f32 %v1735_v57, 1.0  ;;  %2320 = vmatpush3.xpose.msra.mxu0 %v1849_v48  ;;  %2053 = vst [vmem:[%s3913_s12 + $0x78] sm:$0xff] %v1849_v48  ;;  %v1828_v44 = vmul.f32 %v2626_v8, %v3656_v41  ;;  %v3828_v15 = vpop.permute.xlu1 %1882 }
 0x7b5   :  { %2321 = vmatprep.subr.mxu0 %v3975_v31 }
 0x7b6   :  { %2633 = vrsqrt.f32 %v1784_v1  ;;  %v1848_v50 = vmul.f32 %v3744_v63, %v1828_v44  ;;  %v1860_v44 = vmul.f32 %v3755_v14, %v3392_v0  ;;  %v1880_v0 = vmul.f32 %v3819_v6, %v3406_v20 }
 0x7b7   :  { %v2628_v34 = vpop.eup %2627  ;;  %v1733_v21 = vpop.xlane.xlu0 %1732 }
 0x7b8   :  { %v1783_v37 = vmax.f32 %v1733_v21, 1.0  ;;  %2322 = vmatpush3.xpose.msra.mxu0 %v1848_v50  ;;  %2052 = vst [vmem:[%s3913_s12 + $0x70] sm:$0xff] %v1848_v50  ;;  %v1821_v54 = vmul.f32 %v2628_v34, %v3669_v19  ;;  %v1888_v58 = vpop.permute.xlu1 %1887  ;;  %v1870_v50 = vmul.f32 %v3799_v45, %v3398_v46  ;;  %v1885_v46 = vmul.f32 %v3828_v15, %v3409_v23 }
 0x7b9   :  { %2323 = vmatprep.subr.mxu0 %v3975_v31  ;;  %v1890_v34 = vmul.f32 %v1888_v58, %v3418_v11 }
 0x7ba   :  { %2635 = vrsqrt.f32 %v1783_v37  ;;  %v1841_v41 = vmul.f32 %v3744_v63, %v1821_v54 }
 0x7bb   :  { %v2630_v33 = vpop.eup %2629  ;;  %v1729_v38 = vpop.xlane.xlu0 %1728  ;;  %v1934_v45 = vadd.f32 %v1890_v34, %v1885_v46 }
 0x7bc   :  { %v1781_v18 = vmax.f32 %v1729_v38, 1.0  ;;  %2324 = vmatpush3.xpose.msra.mxu0 %v1847_v25  ;;  %2045 = vst [vmem:[%s3913_s12 + $0x38] sm:$0xff] %v1841_v41  ;;  %v1820_v49 = vmul.f32 %v2630_v33, %v3679_v5 }
 0x7bd   :  { %2325 = vmatprep.subr.mxu0 %v3975_v31 }
 0x7be   :  { %2637 = vrsqrt.f32 %v1781_v18  ;;  %v1840_v19 = vmul.f32 %v3744_v63, %v1820_v49 }
 0x7bf   :  { %v2632_v40 = vpop.eup %2631 }
 0x7c0   :  { %2326 = vmatpush3.xpose.msra.mxu0 %v1846_v39  ;;  %2044 = vst [vmem:[%s3913_s12 + $0x30] sm:$0xff] %v1840_v19  ;;  %v1819_v10 = vmul.f32 %v2632_v40, %v3688_v60  ;;  %v1898_v60 = vpop.permute.xlu1 %1897 }
 0x7c1   :  { %2327 = vmatprep.subr.mxu0 %v3975_v31  ;;  %v1900_v11 = vmul.f32 %v1898_v60, %v3352_v12 }
 0x7c2   :  { %v1839_v25 = vmul.f32 %v3744_v63, %v1819_v10 }
 0x7c3   :  { %v2634_v24 = vpop.eup %2633 }
 0x7c4   :  { %2328 = vmatpush3.xpose.msra.mxu0 %v3767_v47  ;;  %2043 = vst [vmem:[%s3913_s12 + $0x28] sm:$0xff] %v1839_v25  ;;  %v1818_v5 = vmul.f32 %v2634_v24, %v3696_v61  ;;  %v1853_v61 = vpop.permute.xlu0 %1852  ;;  %v1903_v3 = vpop.permute.xlu1 %1902 }
 0x7c5   :  { %2329 = vmatprep.subr.mxu0 %v3975_v31  ;;  %v1855_v48 = vmul.f32 %v1853_v61, %v3370_v35 }
 0x7c6   :  { %v1838_v59 = vmul.f32 %v3744_v63, %v1818_v5 }
 0x7c7   :  { %v2636_v36 = vpop.eup %2635 }
 0x7c8   :  { %2330 = vmatpush3.xpose.msra.mxu0 %v3785_v28  ;;  %2042 = vst [vmem:[%s3913_s12 + $0x20] sm:$0xff] %v1838_v59  ;;  %v1817_v47 = vmul.f32 %v2636_v36, %v3704_v4  ;;  %v1893_v4 = vpop.permute.xlu0 %1892 }
 0x7c9   :  { %2331 = vmatprep.subr.mxu0 %v3975_v31  ;;  %v1895_v35 = vmul.f32 %v1893_v4, %v3349_v42  ;;  %v1875_v42 = vmul.f32 %v3807_v51, %v3401_v9 }
 0x7ca   :  { %v1837_v55 = vmul.f32 %v3744_v63, %v1817_v47 }
 0x7cb   :  { %v2638_v39 = vpop.eup %2637  ;;  %v1935_v37 = vadd.f32 %v1900_v11, %v1895_v35  ;;  %v1933_v20 = vadd.f32 %v1880_v0, %v1875_v42 }
 0x7cc   :  { %2332 = vmatpush3.xpose.msra.mxu0 %v3748_v30  ;;  %2041 = vst [vmem:[%s3913_s12 + $0x18] sm:$0xff] %v1837_v55  ;;  %v1815_v28 = vmul.f32 %v2638_v39, %v3713_v7  ;;  %v1913_v30 = vpop.permute.xlu1 %1912 }
 0x7cd   :  { %2333 = vmatprep.subr.mxu0 %v3975_v31  ;;  %v1908_v52 = vpop.permute.xlu0 %1907  ;;  %v1915_v21 = vmul.f32 %v1913_v30, %v3364_v17  ;;  %v1940_v23 = vadd.f32 %v1934_v45, %v1933_v20 }
 0x7ce   :  { %v1835_v29 = vmul.f32 %v3744_v63, %v1815_v28  ;;  %v1910_v57 = vmul.f32 %v1908_v52, %v3358_v2  ;;  %v1865_v2 = vmul.f32 %v3772_v16, %v3395_v62 }
 0x7d0   :  { %2334 = vmatpush3.xpose.msra.mxu0 %v3758_v27  ;;  %2039 = vst [vmem:[%s3913_s12 + $0x8] sm:$0xff] %v1835_v29  ;;  %v1918_v7 = vpop.permute.xlu1 %1917  ;;  %v1932_v17 = vadd.f32 %v1870_v50, %v1865_v2 }
 0x7d1   :  { %2335 = vmatprep.subr.mxu0 %v3975_v31  ;;  %v1920_v8 = vmul.f32 %v1918_v7, %v3367_v53 }
 0x7d2   :  { %v1923_v63 = vpop.permute.xlu0 %1922 }
 0x7d3   :  { %v1925_v56 = vmul.f32 %v1923_v63, %v3361_v26  ;;  %v1905_v26 = vmul.f32 %v1903_v3, %v3355_v43  ;;  %v1937_v43 = vadd.f32 %v1920_v8, %v1915_v21 }
 0x7d4   :  { %2336 = vmatpush3.xpose.msra.mxu0 %v1841_v41  ;;  %v1928_v27 = vpop.permute.xlu1 %1927 }
 0x7d5   :  { %2337 = vmatprep.subr.mxu0 %v3975_v31  ;;  %v1930_v1 = vmul.f32 %v1928_v27, %v3425_v13  ;;  %v1931_v13 = vadd.f32 %v1860_v44, %v1855_v48  ;;  %v1936_v14 = vadd.f32 %v1910_v57, %v1905_v26 }
 0x7d7   :  { %v1938_v53 = vadd.f32 %v1930_v1, %v1925_v56  ;;  %v1939_v16 = vadd.f32 %v1932_v17, %v1931_v13  ;;  %v1941_v6 = vadd.f32 %v1936_v14, %v1935_v37 }
 0x7d8   :  { %2338 = vmatpush3.xpose.msra.mxu0 %v1840_v19  ;;  %v1949_v41 = vpop.permute.xlu1 %1948 }
 0x7d9   :  { %2339 = vmatprep.subr.mxu0 %v3975_v31  ;;  %v1942_v62 = vadd.f32 %v1938_v53, %v1937_v43  ;;  %v1943_v54 = vadd.f32 %v1940_v23, %v1939_v16 }
 0x7db   :  { %v1944_v12 = vadd.f32 %v1942_v62, %v1941_v6 }
 0x7dc   :  { %2340 = vmatpush3.xpose.msra.mxu0 %v1839_v25 }
 0x7dd   :  { %2341 = vmatprep.subr.mxu0 %v3975_v31 }
 0x7e0   :  { %2342 = vmatpush3.xpose.msra.mxu0 %v1838_v59 }
 0x7e1   :  { %2343 = vmatprep.subr.mxu0 %v3975_v31 }
 0x7e4   :  { %2344 = vmatpush3.xpose.msra.mxu0 %v1837_v55 }
 0x7e5   :  { %2345 = vmatprep.subr.mxu0 %v3975_v31 }
 0x7e8   :  { %2346 = vmatpush3.xpose.msra.mxu0 %v3770_v32  ;;  %v1945_v32 = vadd.f32 %v1944_v12, %v1943_v54 }
 0x7e9   :  { %2347 = vmatprep.subr.mxu0 %v3975_v31 }
 0x7ec   :  { %2348 = vmatpush3.xpose.msra.mxu0 %v1835_v29 }
 0x7ed   :  { %2349 = vmatprep.subr.mxu0 %v3975_v31 }
 0x7f0   :  { %2350 = vmatpush3.xpose.msra.mxu0 %v3788_v22 }
 0x7f3   :  { %2352 = vmatmul.mubr.f32.vlgmr.msra.gmra.mxu0 %v1945_v32 }
 0x8b3   :  { %v2017_v9 = vpop.f32.mrf.mxu0 }
 0x8b4   :  { %v2018_v51 = vadd.f32 %v2017_v9, %v1949_v41 }
 0x8b5   :  { %v2353_v33 = vpop.f32.mrf.mxu0 }
 0x8b6   :  { %2021 = vst [vmem:[%s3914_s10] sm:$0xff] %v2018_v51 }

</bundles_post_ra>
